<compile_context>
chip_gen: v5e
topology: v5e:2x2
jax: 0.10.0
libtpu: 0.0.40
codegen_flags: <defaults>
</compile_context>

<pallas_src>
import functools
import jax
import jax.numpy as jnp
from jax import lax
from jax.experimental import pallas as pl
from jax.experimental.pallas import tpu as pltpu


# ----------------------------------------------------------------------------
# Pallas kernel: one batch element per grid step.
# conv3x3 (9 shifted matmuls) -> BN+ReLU -> 2x grouped 1x1 (block-diag dense)
# -> BN+ReLU -> masked avg pool -> SE gate -> masked avg pool -> FC (lane-padded)
# ----------------------------------------------------------------------------
def aux_layer3_kernel(x_ref, pmask_ref, w1_ref, b1_ref, w2_ref, b2_ref,
                      w3_ref, b3_ref, sw1_ref, sw2_ref, fcw_ref, fcb_ref,
                      o_ref, *, w_in, h_out):
    f32 = jnp.float32
    wdt = w1_ref.dtype                     # bf16 compute dtype for the MXU
    C = x_ref.shape[-1]
    C2 = w2_ref.shape[0]
    wide = h_out * w_in                    # Ho * W "wide" rows (junk cols included)

    # --- 3x3 VALID conv as 9 accumulated matmuls over shifted row windows ----
    acc = jnp.zeros((wide, C2), f32)
    for kh in range(3):
        for kw in range(3):
            k = kh * 3 + kw
            start = kh * w_in + kw
            patch = x_ref[0, start:start + wide, :].astype(wdt)        # (wide, C)
            acc = acc + jnp.dot(patch, w1_ref[k * C:(k + 1) * C, :],
                                preferred_element_type=f32)
    h = jnp.maximum(acc + b1_ref[...], 0.0)                            # (wide, 2C)

    # --- two grouped 1x1 convs (block-diagonal dense, BN folded) + ReLU ------
    h = jnp.dot(h.astype(wdt), w2_ref[...], preferred_element_type=f32)
    h = jnp.maximum(h + b2_ref[...], 0.0)
    x2 = jnp.dot(h.astype(wdt), w3_ref[...], preferred_element_type=f32)
    x2 = jnp.maximum(x2 + b3_ref[...], 0.0)                            # (wide, 2C)

    # --- AdaptiveAvgPool2d((1,1)) == masked mean over spatial rows -----------
    pmask = pmask_ref[...]                                             # (wide,1) {1/P,0}
    pooled = jnp.sum(x2 * pmask, axis=0, keepdims=True)                # (1, 2C)

    # --- seBlock: Linear -> ReLU -> Linear -> Sigmoid ------------------------
    s = jnp.maximum(jnp.dot(pooled.astype(wdt), sw1_ref[...],
                            preferred_element_type=f32), 0.0)
    gates = jax.nn.sigmoid(jnp.dot(s.astype(wdt), sw2_ref[...],
                                   preferred_element_type=f32))        # (1, 2C)

    # --- gate, pool again, FC (lane-padded output) ---------------------------
    pooled2 = jnp.sum(x2 * gates * pmask, axis=0, keepdims=True)       # (1, 2C)
    o_ref[0] = jnp.dot(pooled2.astype(wdt), fcw_ref[...],
                       preferred_element_type=f32) + fcb_ref[...]


# ----------------------------------------------------------------------------
# Glue: BN folding, grouped-conv densification, layout prep, pallas_call wrapper
# ----------------------------------------------------------------------------
def fold_bn(w, b, gamma, beta, mean, var, eps=1e-5):
    """Fold eval-mode BatchNorm into the preceding conv (out channel = axis 0)."""
    scale = gamma / jnp.sqrt(var + eps)
    w_f = w * scale.reshape((-1,) + (1,) * (w.ndim - 1))
    b_f = (b - mean) * scale + beta
    return w_f, b_f


def grouped_1x1_to_dense(w, groups):
    """(Cout, Cin/groups, 1, 1) grouped 1x1 conv -> dense block-diagonal (Cout, Cin)."""
    cout = w.shape[0]
    gs_out = cout // groups
    gs_in = w.shape[1]
    dense = jnp.zeros((cout, groups * gs_in), dtype=w.dtype)
    for g in range(groups):
        dense = dense.at[g * gs_out:(g + 1) * gs_out,
                         g * gs_in:(g + 1) * gs_in].set(w[g * gs_out:(g + 1) * gs_out, :, 0, 0])
    return dense


def make_params(inplanes, num_classes, reduction, seed=0):
    C2 = 2 * inplanes
    ks = list(jax.random.split(jax.random.PRNGKey(seed), 24))
    n = iter(range(24))
    nrm = lambda shape, s: s * jax.random.normal(ks[next(n)], shape, jnp.float32)
    uni = lambda shape: jax.random.uniform(ks[next(n)], shape, jnp.float32)

    p = {}
    p['c1w'] = nrm((C2, inplanes, 3, 3), 0.1)
    p['c1b'] = nrm((C2,), 0.05)
    p['bn1'] = (1.0 + nrm((C2,), 0.1), nrm((C2,), 0.05), nrm((C2,), 0.05), 1.0 + 0.2 * uni((C2,)))
    p['c2w'] = nrm((C2, C2 // 16, 1, 1), 0.2)
    p['c2b'] = nrm((C2,), 0.05)
    p['bn2'] = (1.0 + nrm((C2,), 0.1), nrm((C2,), 0.05), nrm((C2,), 0.05), 1.0 + 0.2 * uni((C2,)))
    p['c3w'] = nrm((C2, C2 // 16, 1, 1), 0.2)
    p['c3b'] = nrm((C2,), 0.05)
    p['bn3'] = (1.0 + nrm((C2,), 0.1), nrm((C2,), 0.05), nrm((C2,), 0.05), 1.0 + 0.2 * uni((C2,)))
    p['se_w1'] = nrm((C2 // reduction, C2), 0.2)   # torch Linear: (out, in), no bias
    p['se_w2'] = nrm((C2, C2 // reduction), 0.2)
    p['fc_w'] = nrm((num_classes, C2), 0.1)
    p['fc_b'] = nrm((num_classes,), 0.05)
    return p


def aux_layer3_pallas(x, params, num_classes, reduction=8, compute_dtype=jnp.bfloat16):
    B, C, H, W = x.shape
    C2 = 2 * C
    Ho, Wo = H - 2, W - 2
    P = Ho * Wo
    wide = Ho * W
    ncpad = ((num_classes + 127) // 128) * 128     # lane-dense output store

    # Channels-last, spatial rows flattened, zero-padded so every shifted 3x3 tap
    # window (start = kh*W + kw, length Ho*W) stays in bounds.
    x_rows = jnp.transpose(x, (0, 2, 3, 1)).reshape(B, H * W, C)
    rpad = ((H * W + 2) + 7) // 8 * 8
    x_rows = jnp.pad(x_rows, ((0, 0), (0, rpad - H * W), (0, 0))).astype(jnp.float32)

    # {1/P, 0} pooling mask over the "wide" rows (wo >= Wo rows are junk).
    col = jnp.arange(wide) % W
    pmask = jnp.where(col < Wo, 1.0 / P, 0.0).astype(jnp.float32).reshape(wide, 1)

    # Fold eval-mode BN into the convs; convert to (in, out) matmul form.
    w1f, b1 = fold_bn(params['c1w'], params['c1b'], *params['bn1'])     # (2C, C, 3, 3)
    w1_mat = jnp.transpose(w1f, (2, 3, 1, 0)).reshape(9 * C, C2)        # row = (kh*3+kw)*C + c

    # TODO(synk): block-diagonal dense grouped conv is fine while 2C <= MXU tile width
    # (here 2C=32); for large inplanes tile per group instead of paying 16x zero FLOPs.
    w2d = grouped_1x1_to_dense(params['c2w'], groups=16)
    w2m, b2 = fold_bn(w2d, params['c2b'], *params['bn2'])
    w2m = w2m.T
    w3d = grouped_1x1_to_dense(params['c3w'], groups=16)
    w3m, b3 = fold_bn(w3d, params['c3b'], *params['bn3'])
    w3m = w3m.T

    sw1 = params['se_w1'].T                                             # (2C, 2C/r)
    sw2 = params['se_w2'].T                                             # (2C/r, 2C)
    fcw = jnp.zeros((C2, ncpad), jnp.float32).at[:, :num_classes].set(params['fc_w'].T)
    fcb = jnp.zeros((1, ncpad), jnp.float32).at[:, :num_classes].set(
        params['fc_b'].reshape(1, num_classes))

    cd = compute_dtype
    w1_mat = w1_mat.astype(cd)
    w2m = w2m.astype(cd)
    w3m = w3m.astype(cd)
    sw1 = sw1.astype(cd)
    sw2 = sw2.astype(cd)
    fcw = fcw.astype(cd)

    def const(shape):
        return pl.BlockSpec(shape, lambda b: (0,) * len(shape))

    grid_spec = pltpu.PrefetchScalarGridSpec(
        num_scalar_prefetch=0,
        grid=(B,),
        in_specs=[
            pl.BlockSpec((1, rpad, C), lambda b: (b, 0, 0)),            # per-batch image
            const((wide, 1)),                                           # pooling mask
            const((9 * C, C2)), const((1, C2)),                         # conv1 (+BN)
            const((C2, C2)), const((1, C2)),                            # grouped 1x1 #1
            const((C2, C2)), const((1, C2)),                            # grouped 1x1 #2
            const((C2, C2 // reduction)), const((C2 // reduction, C2)), # SE block
            const((C2, ncpad)), const((1, ncpad)),                      # FC (padded)
        ],
        out_specs=pl.BlockSpec((1, 1, ncpad), lambda b: (b, 0, 0)),
    )

    out = pl.pallas_call(
        functools.partial(aux_layer3_kernel, w_in=W, h_out=Ho),
        out_shape=jax.ShapeDtypeStruct((B, 1, ncpad), jnp.float32),
        grid_spec=grid_spec,
        compiler_params=pltpu.CompilerParams(dimension_semantics=("parallel",)),
    )(x_rows, pmask, w1_mat, b1.reshape(1, C2), w2m, b2.reshape(1, C2),
      w3m, b3.reshape(1, C2), sw1, sw2, fcw, fcb)

    return out[:, 0, :num_classes]


# ----------------------------------------------------------------------------
# Pure-JAX reference (independent path: lax.conv + explicit BN) for validation
# ----------------------------------------------------------------------------
def aux_layer3_ref(x, params, num_classes):
    hi = lax.Precision.HIGHEST
    dn = ('NCHW', 'OIHW', 'NCHW')

    def bn(h, g, b, m, v, eps=1e-5):
        return (h - m[None, :, None, None]) / jnp.sqrt(v[None, :, None, None] + eps) \
            * g[None, :, None, None] + b[None, :, None, None]

    h = lax.conv_general_dilated(x, params['c1w'], (1, 1), 'VALID',
                                 dimension_numbers=dn, precision=hi)
    h = h + params['c1b'][None, :, None, None]
    h = jnp.maximum(bn(h, *params['bn1']), 0.0)

    h = lax.conv_general_dilated(h, params['c2w'], (1, 1), 'VALID',
                                 dimension_numbers=dn, feature_group_count=16, precision=hi)
    h = h + params['c2b'][None, :, None, None]
    h = jnp.maximum(bn(h, *params['bn2']), 0.0)

    h = lax.conv_general_dilated(h, params['c3w'], (1, 1), 'VALID',
                                 dimension_numbers=dn, feature_group_count=16, precision=hi)
    h = h + params['c3b'][None, :, None, None]
    x2 = jnp.maximum(bn(h, *params['bn3']), 0.0)

    pooled = x2.mean(axis=(2, 3))
    s = jnp.maximum(pooled @ params['se_w1'].T, 0.0)
    gates = jax.nn.sigmoid(s @ params['se_w2'].T)
    gated = x2 * gates[:, :, None, None]
    out = gated.mean(axis=(2, 3))
    return out @ params['fc_w'].T + params['fc_b'][None, :]


if __name__ == "__main__":
    B, inplanes, H, W = 2, 16, 10, 10          # channel = 2*inplanes = 32; groups=16 -> 2 ch/group
    num_classes, reduction = 10, 8

    x = jax.random.normal(jax.random.PRNGKey(0), (B, inplanes, H, W), jnp.float32)
    params = make_params(inplanes, num_classes, reduction)

    out = jax.block_until_ready(aux_layer3_pallas(x, params, num_classes, reduction))
    ref = jax.block_until_ready(aux_layer3_ref(x, params, num_classes))

    assert out.shape == (B, num_classes), out.shape
    assert bool(jnp.all(jnp.isfinite(out)))
    # bf16 weights / activations on the MXU (f32 accumulation) -> slightly loosened tolerance.
    assert bool(jnp.allclose(out, ref, rtol=2e-2, atol=2e-2)), (out, ref)
    print("KERNEL_OK")
</pallas_src>

<mosaic_0001>
module attributes {stable_mosaic.version = 11 : i64} {
  func.func @aux_layer3_kernel(%arg0: i32, %arg1: memref<1x104x16xf32, #tpu.memory_space<vmem>>, %arg2: memref<80x1xf32, #tpu.memory_space<vmem>>, %arg3: memref<144x32xbf16, #tpu.memory_space<vmem>>, %arg4: memref<1x32xf32, #tpu.memory_space<vmem>>, %arg5: memref<32x32xbf16, #tpu.memory_space<vmem>>, %arg6: memref<1x32xf32, #tpu.memory_space<vmem>>, %arg7: memref<32x32xbf16, #tpu.memory_space<vmem>>, %arg8: memref<1x32xf32, #tpu.memory_space<vmem>>, %arg9: memref<32x4xbf16, #tpu.memory_space<vmem>>, %arg10: memref<4x32xbf16, #tpu.memory_space<vmem>>, %arg11: memref<32x128xbf16, #tpu.memory_space<vmem>>, %arg12: memref<1x128xf32, #tpu.memory_space<vmem>>, %arg13: memref<1x1x128xf32, #tpu.memory_space<vmem>>) attributes {dimension_semantics = [#tpu.dimension_semantics<parallel>], iteration_bounds = array<i64: 2>, scalar_prefetch = 0 : i64, scratch_operands = 0 : i64, tpu.core_type = #tpu.core_type<tc>, window_params = [{transform_indices = @transform_0, window_bounds = array<i64: 1, 104, 16>}, {pipeline_mode = #tpu.pipeline_mode<synchronous>, transform_indices = @transform_1, window_bounds = array<i64: 80, 1>}, {pipeline_mode = #tpu.pipeline_mode<synchronous>, transform_indices = @transform_2, window_bounds = array<i64: 144, 32>}, {pipeline_mode = #tpu.pipeline_mode<synchronous>, transform_indices = @transform_3, window_bounds = array<i64: 1, 32>}, {pipeline_mode = #tpu.pipeline_mode<synchronous>, transform_indices = @transform_4, window_bounds = array<i64: 32, 32>}, {pipeline_mode = #tpu.pipeline_mode<synchronous>, transform_indices = @transform_5, window_bounds = array<i64: 1, 32>}, {pipeline_mode = #tpu.pipeline_mode<synchronous>, transform_indices = @transform_6, window_bounds = array<i64: 32, 32>}, {pipeline_mode = #tpu.pipeline_mode<synchronous>, transform_indices = @transform_7, window_bounds = array<i64: 1, 32>}, {pipeline_mode = #tpu.pipeline_mode<synchronous>, transform_indices = @transform_8, window_bounds = array<i64: 32, 4>}, {pipeline_mode = #tpu.pipeline_mode<synchronous>, transform_indices = @transform_9, window_bounds = array<i64: 4, 32>}, {pipeline_mode = #tpu.pipeline_mode<synchronous>, transform_indices = @transform_10, window_bounds = array<i64: 32, 128>}, {pipeline_mode = #tpu.pipeline_mode<synchronous>, transform_indices = @transform_11, window_bounds = array<i64: 1, 128>}, {transform_indices = @transform_12, window_bounds = array<i64: 1, 1, 128>}]} {
    %cst = arith.constant 0.000000e+00 : f32
    %0 = vector.broadcast %cst : f32 to vector<80x32xf32>
    %c0 = arith.constant 0 : index
    %c0_0 = arith.constant 0 : index
    %c0_1 = arith.constant 0 : index
    %1 = vector.load %arg1[%c0, %c0_0, %c0_1] : memref<1x104x16xf32, #tpu.memory_space<vmem>>, vector<1x80x16xf32>
    %2 = vector.shape_cast %1 : vector<1x80x16xf32> to vector<80x16xf32>
    %3 = arith.truncf %2 : vector<80x16xf32> to vector<80x16xbf16>
    %c0_2 = arith.constant 0 : index
    %c0_3 = arith.constant 0 : index
    %4 = vector.load %arg3[%c0_2, %c0_3] : memref<144x32xbf16, #tpu.memory_space<vmem>>, vector<16x32xbf16>
    %cst_4 = arith.constant dense<0.000000e+00> : vector<80x32xf32>
    %5 = tpu.matmul %3, %4, %cst_4 {dimension_numbers = #tpu.dot_dimension_numbers<[1], [0], [0], [1], [0, 0, 1, 1], [], []>} : vector<80x16xbf16>, vector<16x32xbf16>, vector<80x32xf32> -> vector<80x32xf32>
    %6 = arith.addf %0, %5 : vector<80x32xf32>
    %c0_5 = arith.constant 0 : index
    %c1 = arith.constant 1 : index
    %c0_6 = arith.constant 0 : index
    %7 = vector.load %arg1[%c0_5, %c1, %c0_6] : memref<1x104x16xf32, #tpu.memory_space<vmem>>, vector<1x80x16xf32>
    %8 = vector.shape_cast %7 : vector<1x80x16xf32> to vector<80x16xf32>
    %9 = arith.truncf %8 : vector<80x16xf32> to vector<80x16xbf16>
    %c16 = arith.constant 16 : index
    %c0_7 = arith.constant 0 : index
    %10 = vector.load %arg3[%c16, %c0_7] : memref<144x32xbf16, #tpu.memory_space<vmem>>, vector<16x32xbf16>
    %cst_8 = arith.constant dense<0.000000e+00> : vector<80x32xf32>
    %11 = tpu.matmul %9, %10, %cst_8 {dimension_numbers = #tpu.dot_dimension_numbers<[1], [0], [0], [1], [0, 0, 1, 1], [], []>} : vector<80x16xbf16>, vector<16x32xbf16>, vector<80x32xf32> -> vector<80x32xf32>
    %12 = arith.addf %6, %11 : vector<80x32xf32>
    %c0_9 = arith.constant 0 : index
    %c2 = arith.constant 2 : index
    %c0_10 = arith.constant 0 : index
    %13 = vector.load %arg1[%c0_9, %c2, %c0_10] : memref<1x104x16xf32, #tpu.memory_space<vmem>>, vector<1x80x16xf32>
    %14 = vector.shape_cast %13 : vector<1x80x16xf32> to vector<80x16xf32>
    %15 = arith.truncf %14 : vector<80x16xf32> to vector<80x16xbf16>
    %c32 = arith.constant 32 : index
    %c0_11 = arith.constant 0 : index
    %16 = vector.load %arg3[%c32, %c0_11] : memref<144x32xbf16, #tpu.memory_space<vmem>>, vector<16x32xbf16>
    %cst_12 = arith.constant dense<0.000000e+00> : vector<80x32xf32>
    %17 = tpu.matmul %15, %16, %cst_12 {dimension_numbers = #tpu.dot_dimension_numbers<[1], [0], [0], [1], [0, 0, 1, 1], [], []>} : vector<80x16xbf16>, vector<16x32xbf16>, vector<80x32xf32> -> vector<80x32xf32>
    %18 = arith.addf %12, %17 : vector<80x32xf32>
    %c0_13 = arith.constant 0 : index
    %c10 = arith.constant 10 : index
    %c0_14 = arith.constant 0 : index
    %19 = vector.load %arg1[%c0_13, %c10, %c0_14] : memref<1x104x16xf32, #tpu.memory_space<vmem>>, vector<1x80x16xf32>
    %20 = vector.shape_cast %19 : vector<1x80x16xf32> to vector<80x16xf32>
    %21 = arith.truncf %20 : vector<80x16xf32> to vector<80x16xbf16>
    %c48 = arith.constant 48 : index
    %c0_15 = arith.constant 0 : index
    %22 = vector.load %arg3[%c48, %c0_15] : memref<144x32xbf16, #tpu.memory_space<vmem>>, vector<16x32xbf16>
    %cst_16 = arith.constant dense<0.000000e+00> : vector<80x32xf32>
    %23 = tpu.matmul %21, %22, %cst_16 {dimension_numbers = #tpu.dot_dimension_numbers<[1], [0], [0], [1], [0, 0, 1, 1], [], []>} : vector<80x16xbf16>, vector<16x32xbf16>, vector<80x32xf32> -> vector<80x32xf32>
    %24 = arith.addf %18, %23 : vector<80x32xf32>
    %c0_17 = arith.constant 0 : index
    %c11 = arith.constant 11 : index
    %c0_18 = arith.constant 0 : index
    %25 = vector.load %arg1[%c0_17, %c11, %c0_18] : memref<1x104x16xf32, #tpu.memory_space<vmem>>, vector<1x80x16xf32>
    %26 = vector.shape_cast %25 : vector<1x80x16xf32> to vector<80x16xf32>
    %27 = arith.truncf %26 : vector<80x16xf32> to vector<80x16xbf16>
    %c64 = arith.constant 64 : index
    %c0_19 = arith.constant 0 : index
    %28 = vector.load %arg3[%c64, %c0_19] : memref<144x32xbf16, #tpu.memory_space<vmem>>, vector<16x32xbf16>
    %cst_20 = arith.constant dense<0.000000e+00> : vector<80x32xf32>
    %29 = tpu.matmul %27, %28, %cst_20 {dimension_numbers = #tpu.dot_dimension_numbers<[1], [0], [0], [1], [0, 0, 1, 1], [], []>} : vector<80x16xbf16>, vector<16x32xbf16>, vector<80x32xf32> -> vector<80x32xf32>
    %30 = arith.addf %24, %29 : vector<80x32xf32>
    %c0_21 = arith.constant 0 : index
    %c12 = arith.constant 12 : index
    %c0_22 = arith.constant 0 : index
    %31 = vector.load %arg1[%c0_21, %c12, %c0_22] : memref<1x104x16xf32, #tpu.memory_space<vmem>>, vector<1x80x16xf32>
    %32 = vector.shape_cast %31 : vector<1x80x16xf32> to vector<80x16xf32>
    %33 = arith.truncf %32 : vector<80x16xf32> to vector<80x16xbf16>
    %c80 = arith.constant 80 : index
    %c0_23 = arith.constant 0 : index
    %34 = vector.load %arg3[%c80, %c0_23] : memref<144x32xbf16, #tpu.memory_space<vmem>>, vector<16x32xbf16>
    %cst_24 = arith.constant dense<0.000000e+00> : vector<80x32xf32>
    %35 = tpu.matmul %33, %34, %cst_24 {dimension_numbers = #tpu.dot_dimension_numbers<[1], [0], [0], [1], [0, 0, 1, 1], [], []>} : vector<80x16xbf16>, vector<16x32xbf16>, vector<80x32xf32> -> vector<80x32xf32>
    %36 = arith.addf %30, %35 : vector<80x32xf32>
    %c0_25 = arith.constant 0 : index
    %c20 = arith.constant 20 : index
    %c0_26 = arith.constant 0 : index
    %37 = vector.load %arg1[%c0_25, %c20, %c0_26] : memref<1x104x16xf32, #tpu.memory_space<vmem>>, vector<1x80x16xf32>
    %38 = vector.shape_cast %37 : vector<1x80x16xf32> to vector<80x16xf32>
    %39 = arith.truncf %38 : vector<80x16xf32> to vector<80x16xbf16>
    %c96 = arith.constant 96 : index
    %c0_27 = arith.constant 0 : index
    %40 = vector.load %arg3[%c96, %c0_27] : memref<144x32xbf16, #tpu.memory_space<vmem>>, vector<16x32xbf16>
    %cst_28 = arith.constant dense<0.000000e+00> : vector<80x32xf32>
    %41 = tpu.matmul %39, %40, %cst_28 {dimension_numbers = #tpu.dot_dimension_numbers<[1], [0], [0], [1], [0, 0, 1, 1], [], []>} : vector<80x16xbf16>, vector<16x32xbf16>, vector<80x32xf32> -> vector<80x32xf32>
    %42 = arith.addf %36, %41 : vector<80x32xf32>
    %c0_29 = arith.constant 0 : index
    %c21 = arith.constant 21 : index
    %c0_30 = arith.constant 0 : index
    %43 = vector.load %arg1[%c0_29, %c21, %c0_30] : memref<1x104x16xf32, #tpu.memory_space<vmem>>, vector<1x80x16xf32>
    %44 = vector.shape_cast %43 : vector<1x80x16xf32> to vector<80x16xf32>
    %45 = arith.truncf %44 : vector<80x16xf32> to vector<80x16xbf16>
    %c112 = arith.constant 112 : index
    %c0_31 = arith.constant 0 : index
    %46 = vector.load %arg3[%c112, %c0_31] : memref<144x32xbf16, #tpu.memory_space<vmem>>, vector<16x32xbf16>
    %cst_32 = arith.constant dense<0.000000e+00> : vector<80x32xf32>
    %47 = tpu.matmul %45, %46, %cst_32 {dimension_numbers = #tpu.dot_dimension_numbers<[1], [0], [0], [1], [0, 0, 1, 1], [], []>} : vector<80x16xbf16>, vector<16x32xbf16>, vector<80x32xf32> -> vector<80x32xf32>
    %48 = arith.addf %42, %47 : vector<80x32xf32>
    %c0_33 = arith.constant 0 : index
    %c22 = arith.constant 22 : index
    %c0_34 = arith.constant 0 : index
    %49 = vector.load %arg1[%c0_33, %c22, %c0_34] : memref<1x104x16xf32, #tpu.memory_space<vmem>>, vector<1x80x16xf32>
    %50 = vector.shape_cast %49 : vector<1x80x16xf32> to vector<80x16xf32>
    %51 = arith.truncf %50 : vector<80x16xf32> to vector<80x16xbf16>
    %c128 = arith.constant 128 : index
    %c0_35 = arith.constant 0 : index
    %52 = vector.load %arg3[%c128, %c0_35] : memref<144x32xbf16, #tpu.memory_space<vmem>>, vector<16x32xbf16>
    %cst_36 = arith.constant dense<0.000000e+00> : vector<80x32xf32>
    %53 = tpu.matmul %51, %52, %cst_36 {dimension_numbers = #tpu.dot_dimension_numbers<[1], [0], [0], [1], [0, 0, 1, 1], [], []>} : vector<80x16xbf16>, vector<16x32xbf16>, vector<80x32xf32> -> vector<80x32xf32>
    %54 = arith.addf %48, %53 : vector<80x32xf32>
    %c0_37 = arith.constant 0 : index
    %c0_38 = arith.constant 0 : index
    %55 = vector.load %arg4[%c0_37, %c0_38] : memref<1x32xf32, #tpu.memory_space<vmem>>, vector<1x32xf32>
    %56 = vector.broadcast %55 : vector<1x32xf32> to vector<80x32xf32>
    %57 = arith.addf %54, %56 : vector<80x32xf32>
    %cst_39 = arith.constant 0.000000e+00 : f32
    %58 = vector.broadcast %cst_39 : f32 to vector<80x32xf32>
    %59 = arith.maximumf %57, %58 : vector<80x32xf32>
    %60 = arith.truncf %59 : vector<80x32xf32> to vector<80x32xbf16>
    %c0_40 = arith.constant 0 : index
    %c0_41 = arith.constant 0 : index
    %61 = vector.load %arg5[%c0_40, %c0_41] : memref<32x32xbf16, #tpu.memory_space<vmem>>, vector<32x32xbf16>
    %cst_42 = arith.constant dense<0.000000e+00> : vector<80x32xf32>
    %62 = tpu.matmul %60, %61, %cst_42 {dimension_numbers = #tpu.dot_dimension_numbers<[1], [0], [0], [1], [0, 0, 1, 1], [], []>} : vector<80x32xbf16>, vector<32x32xbf16>, vector<80x32xf32> -> vector<80x32xf32>
    %c0_43 = arith.constant 0 : index
    %c0_44 = arith.constant 0 : index
    %63 = vector.load %arg6[%c0_43, %c0_44] : memref<1x32xf32, #tpu.memory_space<vmem>>, vector<1x32xf32>
    %64 = vector.broadcast %63 : vector<1x32xf32> to vector<80x32xf32>
    %65 = arith.addf %62, %64 : vector<80x32xf32>
    %cst_45 = arith.constant 0.000000e+00 : f32
    %66 = vector.broadcast %cst_45 : f32 to vector<80x32xf32>
    %67 = arith.maximumf %65, %66 : vector<80x32xf32>
    %68 = arith.truncf %67 : vector<80x32xf32> to vector<80x32xbf16>
    %c0_46 = arith.constant 0 : index
    %c0_47 = arith.constant 0 : index
    %69 = vector.load %arg7[%c0_46, %c0_47] : memref<32x32xbf16, #tpu.memory_space<vmem>>, vector<32x32xbf16>
    %cst_48 = arith.constant dense<0.000000e+00> : vector<80x32xf32>
    %70 = tpu.matmul %68, %69, %cst_48 {dimension_numbers = #tpu.dot_dimension_numbers<[1], [0], [0], [1], [0, 0, 1, 1], [], []>} : vector<80x32xbf16>, vector<32x32xbf16>, vector<80x32xf32> -> vector<80x32xf32>
    %c0_49 = arith.constant 0 : index
    %c0_50 = arith.constant 0 : index
    %71 = vector.load %arg8[%c0_49, %c0_50] : memref<1x32xf32, #tpu.memory_space<vmem>>, vector<1x32xf32>
    %72 = vector.broadcast %71 : vector<1x32xf32> to vector<80x32xf32>
    %73 = arith.addf %70, %72 : vector<80x32xf32>
    %cst_51 = arith.constant 0.000000e+00 : f32
    %74 = vector.broadcast %cst_51 : f32 to vector<80x32xf32>
    %75 = arith.maximumf %73, %74 : vector<80x32xf32>
    %c0_52 = arith.constant 0 : index
    %c0_53 = arith.constant 0 : index
    %76 = vector.load %arg2[%c0_52, %c0_53] : memref<80x1xf32, #tpu.memory_space<vmem>>, vector<80x1xf32>
    %77 = vector.broadcast %76 : vector<80x1xf32> to vector<80x32xf32>
    %78 = arith.mulf %75, %77 : vector<80x32xf32>
    %cst_54 = arith.constant dense<0.000000e+00> : vector<32xf32>
    %79 = vector.multi_reduction <add>, %78, %cst_54 [0] : vector<80x32xf32> to vector<32xf32>
    %80 = vector.shape_cast %79 : vector<32xf32> to vector<1x32xf32>
    %81 = arith.truncf %80 : vector<1x32xf32> to vector<1x32xbf16>
    %c0_55 = arith.constant 0 : index
    %c0_56 = arith.constant 0 : index
    %82 = vector.load %arg9[%c0_55, %c0_56] : memref<32x4xbf16, #tpu.memory_space<vmem>>, vector<32x4xbf16>
    %cst_57 = arith.constant dense<0.000000e+00> : vector<1x4xf32>
    %83 = tpu.matmul %81, %82, %cst_57 {dimension_numbers = #tpu.dot_dimension_numbers<[1], [0], [0], [1], [0, 0, 1, 1], [], []>} : vector<1x32xbf16>, vector<32x4xbf16>, vector<1x4xf32> -> vector<1x4xf32>
    %cst_58 = arith.constant 0.000000e+00 : f32
    %84 = vector.broadcast %cst_58 : f32 to vector<1x4xf32>
    %85 = arith.maximumf %83, %84 : vector<1x4xf32>
    %86 = arith.truncf %85 : vector<1x4xf32> to vector<1x4xbf16>
    %c0_59 = arith.constant 0 : index
    %c0_60 = arith.constant 0 : index
    %87 = vector.load %arg10[%c0_59, %c0_60] : memref<4x32xbf16, #tpu.memory_space<vmem>>, vector<4x32xbf16>
    %cst_61 = arith.constant dense<0.000000e+00> : vector<1x32xf32>
    %88 = tpu.matmul %86, %87, %cst_61 {dimension_numbers = #tpu.dot_dimension_numbers<[1], [0], [0], [1], [0, 0, 1, 1], [], []>} : vector<1x4xbf16>, vector<4x32xbf16>, vector<1x32xf32> -> vector<1x32xf32>
    %89 = arith.negf %88 : vector<1x32xf32>
    %90 = math.exp %89 : vector<1x32xf32>
    %cst_62 = arith.constant 1.000000e+00 : f32
    %91 = vector.broadcast %cst_62 : f32 to vector<1x32xf32>
    %92 = arith.addf %91, %90 : vector<1x32xf32>
    %93 = arith.divf %91, %92 : vector<1x32xf32>
    %94 = vector.broadcast %93 : vector<1x32xf32> to vector<80x32xf32>
    %95 = arith.mulf %75, %94 : vector<80x32xf32>
    %96 = vector.broadcast %76 : vector<80x1xf32> to vector<80x32xf32>
    %97 = arith.mulf %95, %96 : vector<80x32xf32>
    %cst_63 = arith.constant dense<0.000000e+00> : vector<32xf32>
    %98 = vector.multi_reduction <add>, %97, %cst_63 [0] : vector<80x32xf32> to vector<32xf32>
    %99 = vector.shape_cast %98 : vector<32xf32> to vector<1x32xf32>
    %100 = arith.truncf %99 : vector<1x32xf32> to vector<1x32xbf16>
    %c0_64 = arith.constant 0 : index
    %c0_65 = arith.constant 0 : index
    %101 = vector.load %arg11[%c0_64, %c0_65] : memref<32x128xbf16, #tpu.memory_space<vmem>>, vector<32x128xbf16>
    %cst_66 = arith.constant dense<0.000000e+00> : vector<1x128xf32>
    %102 = tpu.matmul %100, %101, %cst_66 {dimension_numbers = #tpu.dot_dimension_numbers<[1], [0], [0], [1], [0, 0, 1, 1], [], []>} : vector<1x32xbf16>, vector<32x128xbf16>, vector<1x128xf32> -> vector<1x128xf32>
    %c0_67 = arith.constant 0 : index
    %c0_68 = arith.constant 0 : index
    %103 = vector.load %arg12[%c0_67, %c0_68] : memref<1x128xf32, #tpu.memory_space<vmem>>, vector<1x128xf32>
    %104 = arith.addf %102, %103 : vector<1x128xf32>
    %c0_69 = arith.constant 0 : index
    %c0_70 = arith.constant 0 : index
    %c0_71 = arith.constant 0 : index
    %105 = vector.load %arg13[%c0_69, %c0_70, %c0_71] : memref<1x1x128xf32, #tpu.memory_space<vmem>>, vector<1x1x128xf32>
    %106 = vector.shape_cast %105 : vector<1x1x128xf32> to vector<1x128xf32>
    %107 = vector.shape_cast %104 : vector<1x128xf32> to vector<1x1x128xf32>
    tpu.vector_store %arg13[%c0_69, %c0_70, %c0_71], %107 {strides = array<i32>} : memref<1x1x128xf32, #tpu.memory_space<vmem>>, vector<1x1x128xf32>,
    return
  }
  func.func @transform_0(%arg0: i32) -> (i32, i32, i32) {
    %c0_i32 = arith.constant 0 : i32
    %c0_i32_0 = arith.constant 0 : i32
    %c0_i32_1 = arith.constant 0 : i32
    return %arg0, %c0_i32, %c0_i32_0 : i32, i32, i32
  }
  func.func @transform_1(%arg0: i32) -> (i32, i32) {
    %c0_i32 = arith.constant 0 : i32
    %c0_i32_0 = arith.constant 0 : i32
    %c0_i32_1 = arith.constant 0 : i32
    return %c0_i32, %c0_i32_0 : i32, i32
  }
  func.func @transform_2(%arg0: i32) -> (i32, i32) {
    %c0_i32 = arith.constant 0 : i32
    %c0_i32_0 = arith.constant 0 : i32
    %c0_i32_1 = arith.constant 0 : i32
    return %c0_i32, %c0_i32_0 : i32, i32
  }
  func.func @transform_3(%arg0: i32) -> (i32, i32) {
    %c0_i32 = arith.constant 0 : i32
    %c0_i32_0 = arith.constant 0 : i32
    %c0_i32_1 = arith.constant 0 : i32
    return %c0_i32, %c0_i32_0 : i32, i32
  }
  func.func @transform_4(%arg0: i32) -> (i32, i32) {
    %c0_i32 = arith.constant 0 : i32
    %c0_i32_0 = arith.constant 0 : i32
    %c0_i32_1 = arith.constant 0 : i32
    return %c0_i32, %c0_i32_0 : i32, i32
  }
  func.func @transform_5(%arg0: i32) -> (i32, i32) {
    %c0_i32 = arith.constant 0 : i32
    %c0_i32_0 = arith.constant 0 : i32
    %c0_i32_1 = arith.constant 0 : i32
    return %c0_i32, %c0_i32_0 : i32, i32
  }
  func.func @transform_6(%arg0: i32) -> (i32, i32) {
    %c0_i32 = arith.constant 0 : i32
    %c0_i32_0 = arith.constant 0 : i32
    %c0_i32_1 = arith.constant 0 : i32
    return %c0_i32, %c0_i32_0 : i32, i32
  }
  func.func @transform_7(%arg0: i32) -> (i32, i32) {
    %c0_i32 = arith.constant 0 : i32
    %c0_i32_0 = arith.constant 0 : i32
    %c0_i32_1 = arith.constant 0 : i32
    return %c0_i32, %c0_i32_0 : i32, i32
  }
  func.func @transform_8(%arg0: i32) -> (i32, i32) {
    %c0_i32 = arith.constant 0 : i32
    %c0_i32_0 = arith.constant 0 : i32
    %c0_i32_1 = arith.constant 0 : i32
    return %c0_i32, %c0_i32_0 : i32, i32
  }
  func.func @transform_9(%arg0: i32) -> (i32, i32) {
    %c0_i32 = arith.constant 0 : i32
    %c0_i32_0 = arith.constant 0 : i32
    %c0_i32_1 = arith.constant 0 : i32
    return %c0_i32, %c0_i32_0 : i32, i32
  }
  func.func @transform_10(%arg0: i32) -> (i32, i32) {
    %c0_i32 = arith.constant 0 : i32
    %c0_i32_0 = arith.constant 0 : i32
    %c0_i32_1 = arith.constant 0 : i32
    return %c0_i32, %c0_i32_0 : i32, i32
  }
  func.func @transform_11(%arg0: i32) -> (i32, i32) {
    %c0_i32 = arith.constant 0 : i32
    %c0_i32_0 = arith.constant 0 : i32
    %c0_i32_1 = arith.constant 0 : i32
    return %c0_i32, %c0_i32_0 : i32, i32
  }
  func.func @transform_12(%arg0: i32) -> (i32, i32, i32) {
    %c0_i32 = arith.constant 0 : i32
    %c0_i32_0 = arith.constant 0 : i32
    %c0_i32_1 = arith.constant 0 : i32
    return %arg0, %c0_i32, %c0_i32_0 : i32, i32, i32
  }
}

</mosaic_0001>

<bundles_post_ra>
// kernel: tpu_custom_call.1
= control target key start
LH: loop header
LB: loop body
LE: loop exit
PB: predicated region body
PF: predicated region fallthrough
CT: control target
= control target key end

     0   :  { %s2469_s0 = inlined_call_operand.vmem [shape: f32[2,104,16], index: 0, kind: input, shape index: {}]   ;;  %s2470_s1 = inlined_call_operand.vmem [shape: f32[80,1], index: 1, kind: input, shape index: {}]   ;;  %s2471_s2 = inlined_call_operand.vmem [shape: bf16[144,32], index: 2, kind: input, shape index: {}]   ;;  %s2472_s3 = inlined_call_operand.vmem [shape: f32[1,32], index: 3, kind: input, shape index: {}]   ;;  %s2473_s4 = inlined_call_operand.vmem [shape: bf16[32,32], index: 4, kind: input, shape index: {}]   ;;  %s2474_s5 = inlined_call_operand.vmem [shape: f32[1,32], index: 5, kind: input, shape index: {}]   ;;  %s2475_s6 = inlined_call_operand.vmem [shape: bf16[32,32], index: 6, kind: input, shape index: {}]   ;;  %s2476_s7 = inlined_call_operand.vmem [shape: f32[1,32], index: 7, kind: input, shape index: {}]   ;;  %s2477_s8 = inlined_call_operand.vmem [shape: bf16[32,4], index: 8, kind: input, shape index: {}]   ;;  %s2478_s9 = inlined_call_operand.vmem [shape: bf16[4,32], index: 9, kind: input, shape index: {}]   ;;  %s2479_s10 = inlined_call_operand.vmem [shape: bf16[32,128], index: 10, kind: input, shape index: {}]   ;;  %s2480_s11 = inlined_call_operand.vmem [shape: f32[1,128], index: 11, kind: input, shape index: {}]   ;;  %s2481_s12 = inlined_call_operand.hbm [shape: f32[2,1,128], index: 12, kind: output, shape index: {}]  }
   0x1   :  { %2482 = sst [smem:[#allocation6_spill]] %s2469_s0 }
   0x2   :  { %2483 = sst [smem:[#allocation7_spill]] %s2470_s1 }
   0x3   :  { %17 = vsyncpa [#allocation3], 0 }
   0x4   :  { %19 = vsyncpa [#allocation3 + $0x1], 0  ;;  %s1976_s21 = smov 0   ;;  %s1978_s22 = smov 0  }
   0x5   :  { %s1980_s23 = smov 0   ;;  %s1982_s24 = smov 0  }
   0x6 LB: > { %s1997_s25 = sadd.s32 4294967295, %s1908_s24   ;;  %s1644_s26 = sadd.s32 4294967294, %s1908_s24   ;;  %s1908_s24 = sphi %s1982_s24, %s2493_s24   ;;  %s1904_s23 = sphi %s1980_s23, %s2492_s23   ;;  %s1900_s22 = sphi %s1978_s22, %s2491_s22   ;;  %s1896_s21 = sphi %s1976_s21, %s2490_s21  }
   0x7   : > { %s2001_s27 = sadd.s32 1, %s1908_s24   ;;  %s289_s28 = sadd.s32 1, %s1904_s23 }
   0x8   : > { %s286_s29 = ssub.s32 %s1908_s24, %s2001_s27  ;;  %p299_p0 = scmp.ne.s32.totalorder %s1904_s23, %s1900_s22 }
   0x9   : > { %p287_p1 = scmp.eq.s32.totalorder %s286_s29, 0  ;;  %p300_p2 = scmp.eq.s32.totalorder %s1997_s25, 1 }
   0xa   : > { %p305_p3 = scmp.ne.s32.totalorder %s1900_s22, %s1896_s21  ;;  %p306_p4 = scmp.eq.s32.totalorder %s1644_s26, 1 }
   0xb   : > { %s2012_s30 = scalar_select %p287_p1, %s1904_s23, %s289_s28  }
   0xc   : > { %p2014_p5 = por %p300_p2, %p299_p0  ;;  %p2018_p6 = por %p306_p4, %p305_p3 }
   0xd   : > { %2484 = sst [smem:[#allocation5_spill]] %s2012_s30  ;;  %p1647_p7 = scmp.ge.s32.totalorder %s1908_s24, 1 }
   0xe   : > { %p365_p8 = scmp.lt.s32.totalorder %s1908_s24, 3 }
  0x10   : > { %p366_p9 = pnand %p1647_p7, %p365_p8 }
  0x11   : > { %p406_p10 = scmp.lt.s32.totalorder (!%p366_p9), %s1997_s25, 1  ;;  %s2487_s0 = sld [smem:[#allocation6_spill]] (!%p366_p9) }
  0x12   : > { %369 = sbr.rel (%p366_p9) target bundleno = 1175 (0x497), region = 68  ;;  %s2488_s1 = sld [smem:[#allocation7_spill]] (!%p366_p9) }
  0x13   : > { %s1866_s29 = scalar_lea.hbm (!%p366_p9), %s2481_s12, 2 }
  0x17   : > { %v1779_v0 = vld [vmem:[%s2471_s2 + $0x8] sm:$0xff]  ;;  %v1778_v1 = vld [vmem:[%s2471_s2] sm:$0xff]  ;;  %v1780_v2 = vld [vmem:[%s2471_s2 + $0x10] sm:$0xff]  ;;  %s407_s15 = scalar_select %p406_p10, %s1997_s25, 1  ;;  %vm452_vm0 = vcmask 130048   ;;  %vm1180_vm1 = vcmask 261120  }
  0x18   : > { %v1781_v3 = vld [vmem:[%s2471_s2 + $0x18] sm:$0xff]  ;;  %v1782_v4 = vld [vmem:[%s2471_s2 + $0x20] sm:$0xff]  ;;  %475 = vmatpush.bf16.msra.mxu0 %v1779_v0  ;;  %530 = vmatpush.bf16.msra.mxu1 %v1778_v1  ;;  %v1784_v36 = vld [vmem:[%s2471_s2 + $0x30] sm:$0xff]  ;;  %vm1459_vm2 = vcmask 1041408   ;;  %vm1455_vm3 = vcmask 31744  }
  0x19   : > { %602 = vmatpush.bf16.msra.mxu2 %v1780_v2  ;;  %684 = vmatpush.bf16.msra.mxu3 %v1781_v3  ;;  %s1795_s16 = smul.u32 104, %s407_s15  ;;  %v1785_v37 = vld [vmem:[%s2471_s2 + $0x38] sm:$0xff]  ;;  %v1783_v38 = vld [vmem:[%s2471_s2 + $0x28] sm:$0xff]  ;;  %v1786_v49 = vld [vmem:[%s2471_s2 + $0x40] sm:$0xff]  ;;  %s1585_s15 = scalar_lea.hbm %s2481_s12, %s1997_s25 }
  0x1a   : > { %s1589_s20 = sshll.u32 %s1585_s15, 4  ;;  %s1590_s20 = int_to_ptr.hbm [resolvable:$true] %s1589_s20 }
  0x1b   : > { %s2044_s19 = scalar_lea.vmem %s2487_s0, %s1795_s16  ;;  %s1860_s0 = sshra.s32 %s1590_s20, 4  ;;  %s1861_s0 = int_to_ptr.hbm [resolvable:$true] %s1860_s0 }
  0x1c   : > { %766 = vmatpush.bf16.msrb.mxu0 %v1782_v4  ;;  %v429_v5 = vld [vmem:[%s2044_s19 + $0x1] sm:$0xff]  ;;  %v430_v6 = vld [vmem:[%s2044_s19 + $0x9] sm:$0xff]  ;;  %v640_v14 = vld [vmem:[%s2044_s19 + $0x12] sm:$0xff]  ;;  %848 = vmatpush.bf16.msrb.mxu1 %v1783_v38  ;;  %p1867_p0 = scmp.lt.s32.totalorder %s1861_s0, %s2481_s12 }
  0x1d   : > { %v412_v7 = vld [vmem:[%s2044_s19] sm:$0xff]  ;;  %v439_v8 = vpack.c.bf16 %v430_v6, %v429_v5  ;;  %v413_v9 = vld [vmem:[%s2044_s19 + $0x8] sm:$0xff]  ;;  %v431_v16 = vld [vmem:[%s2044_s19 + $0x11] sm:$0xff]  ;;  %930 = vmatpush.bf16.msrb.mxu2 %v1784_v36  ;;  %1012 = vmatpush.bf16.msrb.mxu3 %v1785_v37 }
  0x1e   : > { %v557_v10 = vld [vmem:[%s2044_s19 + $0x2] sm:$0xff]  ;;  %v558_v11 = vld [vmem:[%s2044_s19 + $0xa] sm:$0xff]  ;;  %v422_v12 = vpack.c.bf16 %v413_v9, %v412_v7  ;;  %v432_v17 = vld [vmem:[%s2044_s19 + $0x19] sm:$0xff] }
  0x1f   : > { %v567_v13 = vpack.c.bf16 %v558_v11, %v557_v10  ;;  %1653 = vmatmul.msk.bf16.vlgmr.msra.gmra.mxu0 %vm452_vm0, %v439_v8  ;;  %v649_v15 = vpack.c.bf16 %v640_v14, %v558_v11  ;;  %v414_v18 = vld [vmem:[%s2044_s19 + $0x10] sm:$0xff]  ;;  %v415_v19 = vld [vmem:[%s2044_s19 + $0x18] sm:$0xff]  ;;  %v642_v21 = vld [vmem:[%s2044_s19 + $0x22] sm:$0xff]  ;;  %v440_v22 = vpack.c.bf16 %v432_v17, %v431_v16 }
  0x20   : > { %1662 = vmatmul.msk.bf16.vlgmr.msra.gmra.mxu1 %vm452_vm0, %v422_v12  ;;  %v560_v20 = vld [vmem:[%s2044_s19 + $0x1a] sm:$0xff]  ;;  %v423_v23 = vpack.c.bf16 %v415_v19, %v414_v18  ;;  %v434_v27 = vld [vmem:[%s2044_s19 + $0x29] sm:$0xff]  ;;  %v644_v31 = vld [vmem:[%s2044_s19 + $0x32] sm:$0xff]  ;;  %1094 = vmatpush.bf16.msra.mxu0 %v1786_v49 }
  0x21   : > { %1671 = vmatmul.msk.bf16.vlgmr.msra.gmra.mxu2 %vm452_vm0, %v567_v13  ;;  %1680 = vmatmul.msk.bf16.vlgmr.msra.gmra.mxu3 %vm452_vm0, %v649_v15  ;;  %v568_v24 = vpack.c.bf16 %v560_v20, %v640_v14  ;;  %v650_v25 = vpack.c.bf16 %v642_v21, %v560_v20  ;;  %v433_v26 = vld [vmem:[%s2044_s19 + $0x21] sm:$0xff]  ;;  %v562_v30 = vld [vmem:[%s2044_s19 + $0x2a] sm:$0xff]  ;;  %v436_v40 = vld [vmem:[%s2044_s19 + $0x39] sm:$0xff] }
  0x22   : > { %v416_v28 = vld [vmem:[%s2044_s19 + $0x20] sm:$0xff]  ;;  %v417_v29 = vld [vmem:[%s2044_s19 + $0x28] sm:$0xff]  ;;  %v441_v32 = vpack.c.bf16 %v434_v27, %v433_v26  ;;  %v569_v34 = vpack.c.bf16 %v562_v30, %v642_v21  ;;  %v651_v35 = vpack.c.bf16 %v644_v31, %v562_v30  ;;  %v435_v39 = vld [vmem:[%s2044_s19 + $0x31] sm:$0xff] }
  0x23   : > { %v424_v33 = vpack.c.bf16 %v417_v29, %v416_v28  ;;  %v418_v41 = vld [vmem:[%s2044_s19 + $0x30] sm:$0xff]  ;;  %v419_v42 = vld [vmem:[%s2044_s19 + $0x38] sm:$0xff]  ;;  %v646_v44 = vld [vmem:[%s2044_s19 + $0x42] sm:$0xff]  ;;  %v442_v45 = vpack.c.bf16 %v436_v40, %v435_v39 }
  0x24   : > { %v564_v43 = vld [vmem:[%s2044_s19 + $0x3a] sm:$0xff]  ;;  %v425_v46 = vpack.c.bf16 %v419_v42, %v418_v41  ;;  %v438_v51 = vld [vmem:[%s2044_s19 + $0x49] sm:$0xff]  ;;  %v648_v55 = vld [vmem:[%s2044_s19 + $0x52] sm:$0xff] }
  0x25   : > { %v570_v47 = vpack.c.bf16 %v564_v43, %v644_v31  ;;  %v652_v48 = vpack.c.bf16 %v646_v44, %v564_v43  ;;  %v437_v50 = vld [vmem:[%s2044_s19 + $0x41] sm:$0xff]  ;;  %v566_v54 = vld [vmem:[%s2044_s19 + $0x4a] sm:$0xff]  ;;  %v722_v61 = vld [vmem:[%s2044_s19 + $0x13] sm:$0xff] }
  0x26   : > { %v420_v52 = vld [vmem:[%s2044_s19 + $0x40] sm:$0xff]  ;;  %v421_v53 = vld [vmem:[%s2044_s19 + $0x48] sm:$0xff]  ;;  %v443_v56 = vpack.c.bf16 %v438_v51, %v437_v50  ;;  %v571_v58 = vpack.c.bf16 %v566_v54, %v646_v44  ;;  %v653_v59 = vpack.c.bf16 %v648_v55, %v566_v54  ;;  %v885_v62 = vld [vmem:[%s2044_s19 + $0x14] sm:$0xff] }
  0x27   : > { %v426_v57 = vpack.c.bf16 %v421_v53, %v420_v52  ;;  %v721_v60 = vld [vmem:[%s2044_s19 + $0xb] sm:$0xff]  ;;  %v886_v63 = vld [vmem:[%s2044_s19 + $0x1c] sm:$0xff]  ;;  %v726_v18 = vld [vmem:[%s2044_s19 + $0x33] sm:$0xff] }
  0x28   : > { %v803_v0 = vld [vmem:[%s2044_s19 + $0xc] sm:$0xff]  ;;  %v967_v1 = vld [vmem:[%s2044_s19 + $0x15] sm:$0xff]  ;;  %v968_v2 = vld [vmem:[%s2044_s19 + $0x1d] sm:$0xff]  ;;  %v731_v3 = vpack.c.bf16 %v722_v61, %v721_v60  ;;  %v895_v4 = vpack.c.bf16 %v886_v63, %v885_v62 }
  0x29   : > { %v813_v5 = vpack.c.bf16 %v885_v62, %v803_v0  ;;  %v977_v6 = vpack.c.bf16 %v968_v2, %v967_v1  ;;  %v723_v7 = vld [vmem:[%s2044_s19 + $0x1b] sm:$0xff]  ;;  %v724_v8 = vld [vmem:[%s2044_s19 + $0x23] sm:$0xff]  ;;  %v888_v10 = vld [vmem:[%s2044_s19 + $0x2c] sm:$0xff] }
  0x2a   : > { %v887_v9 = vld [vmem:[%s2044_s19 + $0x24] sm:$0xff]  ;;  %v970_v12 = vld [vmem:[%s2044_s19 + $0x2d] sm:$0xff]  ;;  %v732_v13 = vpack.c.bf16 %v724_v8, %v723_v7  ;;  %v890_v20 = vld [vmem:[%s2044_s19 + $0x3c] sm:$0xff] }
  0x2b   : > { %v969_v11 = vld [vmem:[%s2044_s19 + $0x25] sm:$0xff]  ;;  %v896_v14 = vpack.c.bf16 %v888_v10, %v887_v9  ;;  %v814_v15 = vpack.c.bf16 %v887_v9, %v886_v63  ;;  %v889_v19 = vld [vmem:[%s2044_s19 + $0x34] sm:$0xff]  ;;  %v894_v49 = vld [vmem:[%s2044_s19 + $0x5c] sm:$0xff] }
  0x2c   : > { %v978_v16 = vpack.c.bf16 %v970_v12, %v969_v11  ;;  %v725_v17 = vld [vmem:[%s2044_s19 + $0x2b] sm:$0xff]  ;;  %v971_v21 = vld [vmem:[%s2044_s19 + $0x35] sm:$0xff]  ;;  %v728_v28 = vld [vmem:[%s2044_s19 + $0x43] sm:$0xff] }
  0x2d   : > { %v727_v27 = vld [vmem:[%s2044_s19 + $0x3b] sm:$0xff]  ;;  %v891_v29 = vld [vmem:[%s2044_s19 + $0x44] sm:$0xff]  ;;  %v892_v30 = vld [vmem:[%s2044_s19 + $0x4c] sm:$0xff] }
  0x2e   : > { %v973_v31 = vld [vmem:[%s2044_s19 + $0x45] sm:$0xff]  ;;  %v816_v36 = vpack.c.bf16 %v891_v29, %v890_v20  ;;  %v975_v50 = vld [vmem:[%s2044_s19 + $0x55] sm:$0xff]  ;;  %v976_v51 = vld [vmem:[%s2044_s19 + $0x5d] sm:$0xff] }
  0x2f   : > { %1654 = vmatmul.msk.bf16.gmra.mxu0 %vm452_vm0, %v440_v22  ;;  %v972_v22 = vld [vmem:[%s2044_s19 + $0x3d] sm:$0xff] }
  0x30   : > { %1663 = vmatmul.msk.bf16.gmra.mxu1 %vm452_vm0, %v423_v23  ;;  %v733_v23 = vpack.c.bf16 %v726_v18, %v725_v17  ;;  %v979_v26 = vpack.c.bf16 %v972_v22, %v971_v21  ;;  %v1052_v21 = vld [vmem:[%s2044_s19 + $0x2e] sm:$0xff] }
  0x31   : > { %1672 = vmatmul.msk.bf16.gmra.mxu2 %vm452_vm0, %v568_v24  ;;  %1681 = vmatmul.msk.bf16.gmra.mxu3 %vm452_vm0, %v650_v25  ;;  %v897_v24 = vpack.c.bf16 %v890_v20, %v889_v19  ;;  %v815_v25 = vpack.c.bf16 %v889_v19, %v888_v10  ;;  %v1051_v20 = vld [vmem:[%s2044_s19 + $0x26] sm:$0xff] }
  0x3f   : > { %1655 = vmatmul.msk.bf16.gmra.mxu0 %vm452_vm0, %v441_v32  ;;  %v974_v32 = vld [vmem:[%s2044_s19 + $0x4d] sm:$0xff] }
  0x40   : > { %1664 = vmatmul.msk.bf16.gmra.mxu1 %vm452_vm0, %v424_v33  ;;  %v734_v33 = vpack.c.bf16 %v728_v28, %v727_v27  ;;  %v980_v38 = vpack.c.bf16 %v974_v32, %v973_v31 }
  0x41   : > { %1673 = vmatmul.msk.bf16.gmra.mxu2 %vm452_vm0, %v569_v34  ;;  %1682 = vmatmul.msk.bf16.gmra.mxu3 %vm452_vm0, %v651_v35  ;;  %v898_v35 = vpack.c.bf16 %v892_v30, %v891_v29 }
  0x4f   : > { %1656 = vmatmul.msk.bf16.gmra.mxu0 %vm452_vm0, %v442_v45 }
  0x50   : > { %1665 = vmatmul.msk.bf16.gmra.mxu1 %vm452_vm0, %v425_v46  ;;  %v729_v46 = vld [vmem:[%s2044_s19 + $0x4b] sm:$0xff] }
  0x51   : > { %1674 = vmatmul.msk.bf16.gmra.mxu2 %vm452_vm0, %v570_v47  ;;  %1683 = vmatmul.msk.bf16.gmra.mxu3 %vm452_vm0, %v652_v48  ;;  %v730_v47 = vld [vmem:[%s2044_s19 + $0x53] sm:$0xff] }
  0x52   : > { %v893_v48 = vld [vmem:[%s2044_s19 + $0x54] sm:$0xff]  ;;  %v735_v53 = vpack.c.bf16 %v730_v47, %v729_v46 }
  0x5f   : > { %1657 = vmatmul.msk.bf16.gmra.mxu0 %vm452_vm0, %v443_v56  ;;  %v899_v56 = vpack.c.bf16 %v894_v49, %v893_v48 }
  0x60   : > { %1666 = vmatmul.msk.bf16.gmra.mxu1 %vm452_vm0, %v426_v57  ;;  %v817_v57 = vpack.c.bf16 %v893_v48, %v892_v30 }
  0x61   : > { %1675 = vmatmul.msk.bf16.gmra.mxu2 %vm452_vm0, %v571_v58  ;;  %1684 = vmatmul.msk.bf16.gmra.mxu3 %vm452_vm0, %v653_v59  ;;  %v981_v59 = vpack.c.bf16 %v976_v51, %v975_v50  ;;  %v1788_v51 = vld [vmem:[%s2473_s4 + $0x8] sm:$0xff] }
  0x62   : > { %1202 = vmatpush.bf16.msra.mxu1 %v1788_v51 }
  0x6f   : > { %1689 = vmatmul.msk.bf16.vlgmr.msrb.gmra.mxu0 %vm452_vm0, %v731_v3  ;;  %v1049_v3 = vld [vmem:[%s2044_s19 + $0x16] sm:$0xff] }
  0x70   : > { %1698 = vmatmul.msk.bf16.vlgmr.msrb.gmra.mxu1 %vm452_vm0, %v813_v5 }
  0x71   : > { %1707 = vmatmul.msk.bf16.vlgmr.msrb.gmra.mxu2 %vm452_vm0, %v895_v4  ;;  %1716 = vmatmul.msk.bf16.vlgmr.msrb.gmra.mxu3 %vm452_vm0, %v977_v6  ;;  %v1050_v4 = vld [vmem:[%s2044_s19 + $0x1e] sm:$0xff] }
  0x72   : > { %v1059_v7 = vpack.c.bf16 %v1050_v4, %v1049_v3 }
  0x7f   : > { %1690 = vmatmul.msk.bf16.gmra.mxu0 %vm452_vm0, %v732_v13 }
  0x80   : > { %1699 = vmatmul.msk.bf16.gmra.mxu1 %vm452_vm0, %v814_v15 }
  0x81   : > { %1708 = vmatmul.msk.bf16.gmra.mxu2 %vm452_vm0, %v896_v14  ;;  %1717 = vmatmul.msk.bf16.gmra.mxu3 %vm452_vm0, %v978_v16 }
  0x8f   : > { %1691 = vmatmul.msk.bf16.gmra.mxu0 %vm452_vm0, %v733_v23 }
  0x90   : > { %1700 = vmatmul.msk.bf16.gmra.mxu1 %vm452_vm0, %v815_v25 }
  0x91   : > { %1709 = vmatmul.msk.bf16.gmra.mxu2 %vm452_vm0, %v897_v24  ;;  %1718 = vmatmul.msk.bf16.gmra.mxu3 %vm452_vm0, %v979_v26  ;;  %v1060_v24 = vpack.c.bf16 %v1052_v21, %v1051_v20 }
  0x9c   : > { %v477_v34 = vpop.f32.mrf.mxu0 }
  0x9d   : > { %v532_v37 = vpop.f32.mrf.mxu1 }
  0x9e   : > { %v533_v39 = vadd.f32 %v532_v37, %v477_v34 }
  0x9f   : > { %1692 = vmatmul.msk.bf16.gmra.mxu0 %vm452_vm0, %v734_v33 }
  0xa0   : > { %1701 = vmatmul.msk.bf16.gmra.mxu1 %vm452_vm0, %v816_v36 }
  0xa1   : > { %1710 = vmatmul.msk.bf16.gmra.mxu2 %vm452_vm0, %v898_v35  ;;  %1719 = vmatmul.msk.bf16.gmra.mxu3 %vm452_vm0, %v980_v38  ;;  %v1053_v38 = vld [vmem:[%s2044_s19 + $0x36] sm:$0xff] }
  0xa4   : > { %v604_v40 = vpop.f32.mrf.mxu2  ;;  %v2150_v42 = vpop.f32.mrf.mxu0 }
  0xa5   : > { %v629_v41 = vadd.f32 %v604_v40, %v533_v39  ;;  %v686_v43 = vpop.f32.mrf.mxu3  ;;  %v2152_v44 = vpop.f32.mrf.mxu1  ;;  %v1054_v39 = vld [vmem:[%s2044_s19 + $0x3e] sm:$0xff] }
  0xa7   : > { %v2154_v45 = vadd.f32 %v686_v43, %v629_v41  ;;  %v1061_v41 = vpack.c.bf16 %v1054_v39, %v1053_v38 }
  0xac   : > { %v2162_v52 = vpop.f32.mrf.mxu2  ;;  %v482_v54 = vpop.f32.mrf.mxu0 }
  0xad   : > { %v2164_v55 = vpop.f32.mrf.mxu3  ;;  %v537_v58 = vpop.f32.mrf.mxu1 }
  0xae   : > { %v538_v60 = vadd.f32 %v537_v58, %v482_v54 }
  0xaf   : > { %1693 = vmatmul.msk.bf16.gmra.mxu0 %vm452_vm0, %v735_v53 }
  0xb0   : > { %1702 = vmatmul.msk.bf16.gmra.mxu1 %vm452_vm0, %v817_v57 }
  0xb1   : > { %1711 = vmatmul.msk.bf16.gmra.mxu2 %vm452_vm0, %v899_v56  ;;  %1720 = vmatmul.msk.bf16.gmra.mxu3 %vm452_vm0, %v981_v59 }
  0xb4   : > { %v609_v61 = vpop.f32.mrf.mxu2  ;;  %v484_v63 = vpop.f32.mrf.mxu0 }
  0xb5   : > { %v631_v62 = vadd.f32 %v609_v61, %v538_v60  ;;  %v691_v0 = vpop.f32.mrf.mxu3  ;;  %v539_v1 = vpop.f32.mrf.mxu1  ;;  %v1055_v61 = vld [vmem:[%s2044_s19 + $0x46] sm:$0xff] }
  0xb6   : > { %v540_v5 = vadd.f32 %v539_v1, %v484_v63 }
  0xb7   : > { %v2170_v2 = vadd.f32 %v691_v0, %v631_v62  ;;  %v1056_v62 = vld [vmem:[%s2044_s19 + $0x4e] sm:$0xff] }
  0xb8   : > { %v1062_v0 = vpack.c.bf16 %v1056_v62, %v1055_v61 }
  0xbc   : > { %v611_v6 = vpop.f32.mrf.mxu2  ;;  %v487_v9 = vpop.f32.mrf.mxu0 }
  0xbd   : > { %v632_v8 = vadd.f32 %v611_v6, %v540_v5  ;;  %v693_v10 = vpop.f32.mrf.mxu3  ;;  %v542_v11 = vpop.f32.mrf.mxu1  ;;  %v535_v5 = vadd.f32 %v2152_v44, %v2150_v42 }
  0xbe   : > { %v543_v12 = vadd.f32 %v542_v11, %v487_v9 }
  0xbf   : > { %v2174_v13 = vadd.f32 %v693_v10, %v632_v8  ;;  %1725 = vmatmul.msk.bf16.vlgmr.msra.gmra.mxu0 %vm452_vm0, %v1059_v7  ;;  %v630_v8 = vadd.f32 %v2162_v52, %v535_v5 }
  0xc1   : > { %v712_v9 = vadd.f32 %v2164_v55, %v630_v8 }
  0xc4   : > { %v614_v14 = vpop.f32.mrf.mxu2  ;;  %v489_v16 = vpop.f32.mrf.mxu0 }
  0xc5   : > { %v633_v15 = vadd.f32 %v614_v14, %v543_v12  ;;  %v696_v17 = vpop.f32.mrf.mxu3  ;;  %v544_v18 = vpop.f32.mrf.mxu1  ;;  %v1057_v12 = vld [vmem:[%s2044_s19 + $0x56] sm:$0xff]  ;;  %v1058_v14 = vld [vmem:[%s2044_s19 + $0x5e] sm:$0xff]  ;;  %s404_s19 = sand.u32 1, %s1900_s22  }
  0xc6   : > { %v545_v22 = vadd.f32 %v544_v18, %v489_v16  ;;  %s405_s18 = scalar_lea.vmem [#allocation2], %s404_s19  ;;  %s1577_s26 = scalar_lea.sflag [#allocation3], %s404_s19 }
  0xc7   : > { %v2177_v19 = vadd.f32 %v696_v17, %v633_v15  ;;  %v1063_v15 = vpack.c.bf16 %v1058_v14, %v1057_v12  ;;  %s1587_s30 = sshll.u32 %s405_s18, 4  ;;  %s1588_s30 = int_to_ptr.vmem [resolvable:$true] %s1587_s30 }
  0xcc   : > { %v616_v23 = vpop.f32.mrf.mxu2  ;;  %v492_v26 = vpop.f32.mrf.mxu0 }
  0xcd   : > { %v634_v25 = vadd.f32 %v616_v23, %v545_v22  ;;  %v698_v27 = vpop.f32.mrf.mxu3  ;;  %v547_v28 = vpop.f32.mrf.mxu1 }
  0xce   : > { %v548_v29 = vadd.f32 %v547_v28, %v492_v26 }
  0xcf   : > { %v716_v30 = vadd.f32 %v698_v27, %v634_v25  ;;  %1726 = vmatmul.msk.bf16.gmra.mxu0 %vm452_vm0, %v1060_v24 }
  0xd4   : > { %v619_v31 = vpop.f32.mrf.mxu2  ;;  %v494_v33 = vpop.f32.mrf.mxu0 }
  0xd5   : > { %v635_v32 = vadd.f32 %v619_v31, %v548_v29  ;;  %v701_v34 = vpop.f32.mrf.mxu3  ;;  %v549_v35 = vpop.f32.mrf.mxu1 }
  0xd6   : > { %v550_v36 = vadd.f32 %v549_v35, %v494_v33 }
  0xd7   : > { %v717_v37 = vadd.f32 %v701_v34, %v635_v32 }
  0xdc   : > { %v621_v40 = vpop.f32.mrf.mxu2  ;;  %v497_v46 = vpop.f32.mrf.mxu0 }
  0xdd   : > { %v636_v43 = vadd.f32 %v621_v40, %v550_v36  ;;  %v703_v47 = vpop.f32.mrf.mxu3  ;;  %v552_v48 = vpop.f32.mrf.mxu1 }
  0xde   : > { %v553_v49 = vadd.f32 %v552_v48, %v497_v46 }
  0xdf   : > { %v718_v50 = vadd.f32 %v703_v47, %v636_v43  ;;  %1727 = vmatmul.msk.bf16.gmra.mxu0 %vm452_vm0, %v1061_v41  ;;  %v2218_v47 = vld [vmem:[%s2472_s3] ss:$0 sm:$0xff] }
  0xe4   : > { %v624_v53 = vpop.f32.mrf.mxu2  ;;  %v499_v56 = vpop.f32.mrf.mxu0 }
  0xe5   : > { %v637_v54 = vadd.f32 %v624_v53, %v553_v49  ;;  %v706_v57 = vpop.f32.mrf.mxu3  ;;  %v554_v58 = vpop.f32.mrf.mxu1 }
  0xe6   : > { %v555_v59 = vadd.f32 %v554_v58, %v499_v56 }
  0xe7   : > { %v719_v60 = vadd.f32 %v706_v57, %v637_v54 }
  0xec   : > { %v626_v63 = vpop.f32.mrf.mxu2  ;;  %v768_v4 = vpop.f32.mrf.mxu0 }
  0xed   : > { %v638_v1 = vadd.f32 %v626_v63, %v555_v59  ;;  %v708_v3 = vpop.f32.mrf.mxu3  ;;  %v793_v6 = vadd.f32 %v768_v4, %v2154_v45  ;;  %v1787_v45 = vld [vmem:[%s2473_s4] sm:$0xff] }
  0xee   : > { %1203 = vmatpush.bf16.msra.mxu1 %v1787_v45 }
  0xef   : > { %v720_v7 = vadd.f32 %v708_v3, %v638_v1  ;;  %1728 = vmatmul.msk.bf16.gmra.mxu0 %vm452_vm0, %v1062_v0 }
  0xf4   : > { %v770_v10 = vpop.f32.mrf.mxu0  ;;  %v932_v23 = vpop.f32.mrf.mxu2 }
  0xf5   : > { %v794_v11 = vadd.f32 %v770_v10, %v712_v9 }
  0xfc   : > { %v773_v16 = vpop.f32.mrf.mxu0  ;;  %v934_v27 = vpop.f32.mrf.mxu2 }
  0xfd   : > { %v795_v17 = vadd.f32 %v773_v16, %v2170_v2  ;;  %v850_v2 = vpop.f32.mrf.mxu1 }
  0xfe   : > { %v875_v34 = vadd.f32 %v850_v2, %v793_v6 }
  0xff   : > { %1729 = vmatmul.msk.bf16.gmra.mxu0 %vm452_vm0, %v1063_v15 }
 0x100   : > { %v957_v36 = vadd.f32 %v932_v23, %v875_v34 }
 0x104   : > { %v775_v42 = vpop.f32.mrf.mxu0 }
 0x105   : > { %v796_v44 = vadd.f32 %v775_v42, %v2174_v13  ;;  %v1014_v13 = vpop.f32.mrf.mxu3  ;;  %v852_v26 = vpop.f32.mrf.mxu1 }
 0x106   : > { %v876_v38 = vadd.f32 %v852_v26, %v794_v11  ;;  %v1039_v40 = vadd.f32 %v1014_v13, %v957_v36 }
 0x108   : > { %v958_v41 = vadd.f32 %v934_v27, %v876_v38 }
 0x10c   : > { %v778_v52 = vpop.f32.mrf.mxu0 }
 0x10d   : > { %v797_v55 = vadd.f32 %v778_v52, %v2177_v19  ;;  %v1016_v31 = vpop.f32.mrf.mxu3  ;;  %v855_v32 = vpop.f32.mrf.mxu1 }
 0x10e   : > { %v1040_v48 = vadd.f32 %v1016_v31, %v958_v41  ;;  %v877_v57 = vadd.f32 %v855_v32, %v795_v17  ;;  %v1789_v41 = vld [vmem:[%s2475_s6] sm:$0xff] }
 0x114   : > { %v780_v18 = vpop.f32.mrf.mxu0 }
 0x115   : > { %v2205_v20 = vadd.f32 %v780_v18, %v716_v30  ;;  %v937_v30 = vpop.f32.mrf.mxu2  ;;  %v1019_v35 = vpop.f32.mrf.mxu3 }
 0x116   : > { %v857_v39 = vpop.f32.mrf.mxu1  ;;  %v959_v61 = vadd.f32 %v937_v30, %v877_v57 }
 0x117   : > { %v878_v0 = vadd.f32 %v857_v39, %v796_v44 }
 0x118   : > { %v1041_v3 = vadd.f32 %v1019_v35, %v959_v61 }
 0x11c   : > { %v783_v21 = vpop.f32.mrf.mxu0 }
 0x11d   : > { %v2207_v22 = vadd.f32 %v783_v21, %v717_v37  ;;  %v939_v43 = vpop.f32.mrf.mxu2  ;;  %v1021_v49 = vpop.f32.mrf.mxu3 }
 0x11e   : > { %v860_v56 = vpop.f32.mrf.mxu1  ;;  %v960_v4 = vadd.f32 %v939_v43, %v878_v0 }
 0x11f   : > { %v879_v15 = vadd.f32 %v860_v56, %v797_v55 }
 0x124   : > { %v785_v24 = vpop.f32.mrf.mxu0 }
 0x125   : > { %v2209_v25 = vadd.f32 %v785_v24, %v718_v50  ;;  %v1024_v1 = vpop.f32.mrf.mxu3 }
 0x126   : > { %v862_v6 = vpop.f32.mrf.mxu1 }
 0x127   : > { %v880_v18 = vadd.f32 %v862_v6, %v2205_v20 }
 0x12c   : > { %v788_v28 = vpop.f32.mrf.mxu0 }
 0x12d   : > { %v2211_v29 = vadd.f32 %v788_v28, %v719_v60  ;;  %v942_v60 = vpop.f32.mrf.mxu2  ;;  %v1026_v14 = vpop.f32.mrf.mxu3 }
 0x12e   : > { %v961_v42 = vadd.f32 %v942_v60, %v879_v15  ;;  %v865_v45 = vpop.f32.mrf.mxu1 }
 0x12f   : > { %v881_v30 = vadd.f32 %v865_v45, %v2207_v22 }
 0x130   : > { %v1043_v2 = vadd.f32 %v1024_v1, %v961_v42 }
 0x134   : > { %v790_v19 = vpop.f32.mrf.mxu0 }
 0x135   : > { %v2213_v33 = vadd.f32 %v790_v19, %v720_v7  ;;  %v1042_v7 = vadd.f32 %v1021_v49, %v960_v4  ;;  %v944_v8 = vpop.f32.mrf.mxu2  ;;  %v1029_v13 = vpop.f32.mrf.mxu3 }
 0x136   : > { %v962_v23 = vadd.f32 %v944_v8, %v880_v18  ;;  %v867_v31 = vpop.f32.mrf.mxu1  ;;  %v1325_v18 = vld [vmem:[%s2488_s1 + $0x8] sm:$0xff] }
 0x138   : > { %v1044_v26 = vadd.f32 %v1026_v14, %v962_v23  ;;  %v1326_v23 = vld [vmem:[%s2488_s1 + $0x10] sm:$0xff] }
 0x13c   : > { %v1096_v37 = vpop.f32.mrf.mxu0 }
 0x13d   : > { %v1121_v46 = vadd.f32 %v1096_v37, %v1039_v40  ;;  %v947_v21 = vpop.f32.mrf.mxu2  ;;  %v1790_v37 = vld [vmem:[%s2475_s6 + $0x8] sm:$0xff]  ;;  %v1031_v38 = vpop.f32.mrf.mxu3  ;;  %v882_v40 = vadd.f32 %v867_v31, %v2209_v25 }
 0x13e   : > { %v963_v35 = vadd.f32 %v947_v21, %v881_v30  ;;  %1286 = vmatpush.bf16.msra.mxu2 %v1790_v37 }
 0x13f   : > { %v1135_v51 = vadd.f32 %v2218_v47, %v1121_v46  ;;  %v870_v46 = vpop.f32.mrf.mxu1 }
 0x140   : > { %v1045_v22 = vadd.f32 %v1029_v13, %v963_v35 }
 0x141   : > { %v1145_v58 = vmax.f32 %v1135_v51, 0.0 }
 0x142   : > { %1287 = vmatpush.bf16.msra.mxu2 %v1789_v41  ;;  %v1333_v41 = vld [vmem:[%s2488_s1 + $0x48] sm:$0xff] }
 0x144   : > { %v1098_v50 = vpop.f32.mrf.mxu0 }
 0x145   : > { %v1122_v53 = vadd.f32 %v1098_v50, %v1040_v48  ;;  %v949_v19 = vpop.f32.mrf.mxu2  ;;  %v1034_v56 = vpop.f32.mrf.mxu3 }
 0x146   : > { %v964_v43 = vadd.f32 %v949_v19, %v882_v40 }
 0x147   : > { %v1136_v54 = vadd.f32 %v2218_v47, %v1122_v53  ;;  %v883_v53 = vadd.f32 %v870_v46, %v2211_v29  ;;  %v872_v61 = vpop.f32.mrf.mxu1 }
 0x148   : > { %v1046_v50 = vadd.f32 %v1031_v38, %v964_v43  ;;  %v1331_v38 = vld [vmem:[%s2488_s1 + $0x38] sm:$0xff] }
 0x149   : > { %v1146_v59 = vmax.f32 %v1136_v54, 0.0 }
 0x14b   : > { %v1155_v62 = vpack.c.bf16 %v1146_v59, %v1145_v58 }
 0x14c   : > { %v1101_v63 = vpop.f32.mrf.mxu0 }
 0x14d   : > { %1738 = vmatmul.msk.bf16.vlgmr.msra.gmra.mxu1 %vm1180_vm1, %v1155_v62  ;;  %v1123_v5 = vadd.f32 %v1101_v63, %v1041_v3  ;;  %v952_v49 = vpop.f32.mrf.mxu2  ;;  %v884_v3 = vadd.f32 %v872_v61, %v2213_v33  ;;  %v1036_v6 = vpop.f32.mrf.mxu3  ;;  %v1840_v33 = vld [vmem:[%s2474_s5] ss:$0 sm:$0xff]  ;;  %v1792_v61 = vld [vmem:[%s2477_s8 + $0x8] sm:$0xff] }
 0x14e   : > { %v965_v57 = vadd.f32 %v952_v49, %v883_v53  ;;  %v1332_v53 = vld [vmem:[%s2488_s1 + $0x40] sm:$0xff]  ;;  %1445 = vmatpush.bf16.msra.mxu3 %v1792_v61 }
 0x14f   : > { %v1137_v10 = vadd.f32 %v2218_v47, %v1123_v5 }
 0x150   : > { %v1047_v62 = vadd.f32 %v1034_v56, %v965_v57 }
 0x151   : > { %v1147_v16 = vmax.f32 %v1137_v10, 0.0 }
 0x154   : > { %v1103_v9 = vpop.f32.mrf.mxu0 }
 0x155   : > { %v1124_v11 = vadd.f32 %v1103_v9, %v1042_v7  ;;  %v954_v0 = vpop.f32.mrf.mxu2 }
 0x156   : > { %v966_v29 = vadd.f32 %v954_v0, %v884_v3 }
 0x157   : > { %v1138_v12 = vadd.f32 %v2218_v47, %v1124_v11 }
 0x158   : > { %v1048_v7 = vadd.f32 %v1036_v6, %v966_v29  ;;  %v1841_v6 = vld [vmem:[%s2476_s7] ss:$0 sm:$0xff] }
 0x159   : > { %v1148_v17 = vmax.f32 %v1138_v12, 0.0 }
 0x15b   : > { %v1156_v44 = vpack.c.bf16 %v1148_v17, %v1147_v16  ;;  %v1324_v16 = vld [vmem:[%s2488_s1] sm:$0xff]  ;;  %v1910_v17 = vmov 0  }
 0x15c   : > { %v1106_v52 = vpop.f32.mrf.mxu0  ;;  %1836 = vset.pattern.permute.xlu0 %v1910_v17  ;;  %1837 = vset.pattern.permute.xlu1 %v1910_v17 }
 0x15d   : > { %1739 = vmatmul.msk.bf16.gmra.mxu1 %vm1180_vm1, %v1156_v44  ;;  %v1125_v24 = vadd.f32 %v1106_v52, %v1043_v2  ;;  %1336 = vperm.xlu0 %1836, %v1324_v16  }
 0x15e   : > { %1838 = vset.pattern.permute.xlu2 %v1910_v17  ;;  %1346 = vperm.xlu1 %1837, %v1326_v23  }
 0x15f   : > { %v1139_v28 = vadd.f32 %v2218_v47, %v1125_v24 }
 0x161   : > { %v1149_v34 = vmax.f32 %v1139_v28, 0.0 }
 0x164   : > { %v1108_v27 = vpop.f32.mrf.mxu0 }
 0x165   : > { %v1126_v55 = vadd.f32 %v1108_v27, %v1044_v26  ;;  %1341 = vperm.xlu0 %1836, %v1325_v18  }
 0x167   : > { %v1140_v32 = vadd.f32 %v2218_v47, %v1126_v55  ;;  %v1327_v55 = vld [vmem:[%s2488_s1 + $0x18] sm:$0xff] }
 0x168   : > { %1351 = vperm.xlu1 %1837, %v1327_v55  }
 0x169   : > { %v1150_v20 = vmax.f32 %v1140_v32, 0.0 }
 0x16b   : > { %v1157_v36 = vpack.c.bf16 %v1150_v20, %v1149_v34 }
 0x16c   : > { %v1111_v39 = vpop.f32.mrf.mxu0 }
 0x16d   : > { %1740 = vmatmul.msk.bf16.gmra.mxu1 %vm1180_vm1, %v1157_v36  ;;  %v1127_v48 = vadd.f32 %v1111_v39, %v1045_v22  ;;  %v1330_v36 = vld [vmem:[%s2488_s1 + $0x30] sm:$0xff]  ;;  %v1328_v39 = vld [vmem:[%s2488_s1 + $0x20] sm:$0xff]  ;;  %v1329_v22 = vld [vmem:[%s2488_s1 + $0x28] sm:$0xff]  ;;  %s1862_s1 = scalar_lea.hbm %s1861_s0, 1 }
 0x16e   : > { %1366 = vperm.xlu0 %1836, %v1330_v36   ;;  %1356 = vperm.xlu2 %1838, %v1328_v39   ;;  %v1454_v36 = vld [vmem:[%s2478_s9] sm:$0x3]  ;;  %p1863_p11 = scmp.ne.s32.totalorder %s1861_s0, %s1862_s1  ;;  %p1868_p1 = scmp.lt.s32.totalorder %s1866_s29, %s1862_s1 }
 0x16f   : > { %v1141_v54 = vadd.f32 %v2218_v47, %v1127_v48 }
 0x170   : > { %1371 = vperm.xlu1 %1837, %v1331_v38   ;;  %p1864_p12 = pnand %p1863_p11, %p2014_p5  ;;  %p1869_p2 = por %p1868_p1, %p1867_p0 }
 0x171   : > { %v1151_v59 = vmax.f32 %v1141_v54, 0.0 }
 0x172   : > { %p1865_p13 = pneg %p1864_p12 }
 0x174   : > { %v1113_v51 = vpop.f32.mrf.mxu0  ;;  %p1870_p3 = pnand %p1869_p2, %p1865_p13 }
 0x175   : > { %v1128_v25 = vadd.f32 %v1113_v51, %v1046_v50 }
 0x176   : > { %1381 = vperm.xlu0 %1836, %v1333_v41   ;;  %1361 = vperm.xlu2 %1838, %v1329_v22  }
 0x177   : > { %v1142_v58 = vadd.f32 %v2218_v47, %v1128_v25 }
 0x179   : > { %v1152_v60 = vmax.f32 %v1142_v58, 0.0 }
 0x17b   : > { %v1158_v63 = vpack.c.bf16 %v1152_v60, %v1151_v59 }
 0x17c   : > { %v1116_v1 = vpop.f32.mrf.mxu0 }
 0x17d   : > { %v1129_v4 = vadd.f32 %v1116_v1, %v1047_v62  ;;  %1741 = vmatmul.msk.bf16.gmra.mxu1 %vm1180_vm1, %v1158_v63 }
 0x17e   : > { %1376 = vperm.xlu2 %1838, %v1332_v53  }
 0x17f   : > { %v1143_v5 = vadd.f32 %v2218_v47, %v1129_v4  ;;  %v1791_v4 = vld [vmem:[%s2477_s8] sm:$0xff] }
 0x180   : > { %1446 = vmatpush.bf16.msra.mxu3 %v1791_v4 }
 0x181   : > { %v1153_v11 = vmax.f32 %v1143_v5, 0.0 }
 0x184   : > { %v1118_v8 = vpop.f32.mrf.mxu0 }
 0x185   : > { %v1130_v9 = vadd.f32 %v1118_v8, %v1048_v7 }
 0x187   : > { %v1144_v10 = vadd.f32 %v2218_v47, %v1130_v9 }
 0x189   : > { %v1154_v12 = vmax.f32 %v1144_v10, 0.0 }
 0x18b   : > { %v1159_v14 = vpack.c.bf16 %v1154_v12, %v1153_v11 }
 0x18d   : > { %1742 = vmatmul.msk.bf16.gmra.mxu1 %vm1180_vm1, %v1159_v14 }
 0x1c8   : > { %v2305_v14 = vpop.permute.xlu2 %1356 }
 0x1ca   : > { %v1205_v15 = vpop.f32.mrf.mxu1 }
 0x1cb   : > { %v1206_v47 = vadd.f32 %v1840_v33, %v1205_v15 }
 0x1cd   : > { %v1230_v45 = vmax.f32 %v1206_v47, 0.0 }
 0x1cf   : > { %v2290_v5 = vpop.permute.xlu0 %1336 }
 0x1d0   : > { %v2295_v7 = vpop.permute.xlu1 %1346  ;;  %v2338_v55 = vpop.permute.xlu2 %1361 }
 0x1d2   : > { %v1207_v42 = vpop.f32.mrf.mxu1 }
 0x1d3   : > { %v1208_v44 = vadd.f32 %v1840_v33, %v1207_v42 }
 0x1d5   : > { %v1231_v52 = vmax.f32 %v1208_v44, 0.0 }
 0x1d7   : > { %v1240_v21 = vpack.c.bf16 %v1231_v52, %v1230_v45 }
 0x1d9   : > { %1751 = vmatmul.msk.bf16.vlgmr.msra.gmra.mxu2 %vm1180_vm1, %v1240_v21 }
 0x1da   : > { %v1210_v2 = vpop.f32.mrf.mxu1  ;;  %v2318_v52 = vpop.permute.xlu1 %1351 }
 0x1db   : > { %v1211_v24 = vadd.f32 %v1840_v33, %v1210_v2 }
 0x1dd   : > { %v1232_v27 = vmax.f32 %v1211_v24, 0.0 }
 0x1e2   : > { %v1212_v13 = vpop.f32.mrf.mxu1 }
 0x1e3   : > { %v1213_v26 = vadd.f32 %v1840_v33, %v1212_v13 }
 0x1e5   : > { %v1233_v28 = vmax.f32 %v1213_v26, 0.0 }
 0x1e7   : > { %v1241_v31 = vpack.c.bf16 %v1233_v28, %v1232_v27 }
 0x1e9   : > { %1752 = vmatmul.msk.bf16.gmra.mxu2 %vm1180_vm1, %v1241_v31 }
 0x1ea   : > { %v1215_v32 = vpop.f32.mrf.mxu1 }
 0x1eb   : > { %v1216_v19 = vadd.f32 %v1840_v33, %v1215_v32 }
 0x1ed   : > { %v1234_v20 = vmax.f32 %v1216_v19, 0.0 }
 0x1f2   : > { %v1217_v30 = vpop.f32.mrf.mxu1 }
 0x1f3   : > { %v1218_v34 = vadd.f32 %v1840_v33, %v1217_v30 }
 0x1f5   : > { %v1235_v35 = vmax.f32 %v1218_v34, 0.0 }
 0x1f7   : > { %v1242_v37 = vpack.c.bf16 %v1235_v35, %v1234_v20 }
 0x1f9   : > { %1753 = vmatmul.msk.bf16.gmra.mxu2 %vm1180_vm1, %v1242_v37 }
 0x1fa   : > { %v1220_v40 = vpop.f32.mrf.mxu1 }
 0x1fb   : > { %v1221_v43 = vadd.f32 %v1840_v33, %v1220_v40  ;;  %v1461_v40 = vsel %vm1459_vm2, %v1454_v36, 0  ;;  %v1793_v36 = vld [vmem:[%s2479_s10] sm:$0xff] }
 0x1fc   : > { %1470 = vmatpush.bf16.msrb.mxu3 %v1461_v40 }
 0x1fd   : > { %v1236_v49 = vmax.f32 %v1221_v43, 0.0 }
 0x202   : > { %v1222_v46 = vpop.f32.mrf.mxu1 }
 0x203   : > { %v1223_v48 = vadd.f32 %v1840_v33, %v1222_v46 }
 0x205   : > { %v1237_v50 = vmax.f32 %v1223_v48, 0.0 }
 0x207   : > { %v1243_v51 = vpack.c.bf16 %v1237_v50, %v1236_v49  ;;  %v2363_v50 = vpop.permute.xlu1 %1371 }
 0x209   : > { %1754 = vmatmul.msk.bf16.gmra.mxu2 %vm1180_vm1, %v1243_v51 }
 0x20a   : > { %v1225_v54 = vpop.f32.mrf.mxu1 }
 0x20b   : > { %v1226_v25 = vadd.f32 %v1840_v33, %v1225_v54 }
 0x20d   : > { %v1238_v58 = vmax.f32 %v1226_v25, 0.0  ;;  %v2369_v25 = vpop.permute.xlu2 %1376 }
 0x212   : > { %v1227_v56 = vpop.f32.mrf.mxu1 }
 0x213   : > { %v1228_v57 = vadd.f32 %v1840_v33, %v1227_v56  ;;  %v2308_v33 = vpop.permute.xlu0 %1341 }
 0x215   : > { %v1239_v59 = vmax.f32 %v1228_v57, 0.0 }
 0x217   : > { %v1244_v60 = vpack.c.bf16 %v1239_v59, %v1238_v58 }
 0x219   : > { %1755 = vmatmul.msk.bf16.gmra.mxu2 %vm1180_vm1, %v1244_v60 }
 0x21b   : > { %v2356_v22 = vpop.permute.xlu0 %1366 }
 0x25c   : > { %v1289_v62 = vpop.f32.mrf.mxu2 }
 0x25d   : > { %v2299_v10 = vadd.f32 %v1841_v6, %v1289_v62 }
 0x25f   : > { %v1314_v16 = vmax.f32 %v2299_v10, 0.0 }
 0x261   : > { %v1384_v21 = vmul.f32 %v2290_v5, %v1314_v16 }
 0x263   : > { %v1394_v31 = vsel %vm1180_vm1, %v1384_v21, 0.0 }
 0x264   : > { %v1291_v63 = vpop.f32.mrf.mxu2 }
 0x265   : > { %v2297_v9 = vadd.f32 %v1841_v6, %v1291_v63 }
 0x267   : > { %v1315_v15 = vmax.f32 %v2297_v9, 0.0 }
 0x269   : > { %v1385_v45 = vmul.f32 %v2308_v33, %v1315_v15 }
 0x26b   : > { %v1395_v26 = vsel %vm1180_vm1, %v1385_v45, 0.0 }
 0x26c   : > { %v1294_v0 = vpop.f32.mrf.mxu2  ;;  %v1396_v34 = vadd.f32 %v1395_v26, %v1394_v31 }
 0x26d   : > { %v2301_v11 = vadd.f32 %v1841_v6, %v1294_v0 }
 0x26f   : > { %v1316_v17 = vmax.f32 %v2301_v11, 0.0 }
 0x271   : > { %v1386_v2 = vmul.f32 %v2295_v7, %v1316_v17 }
 0x273   : > { %v1397_v32 = vsel %vm1180_vm1, %v1386_v2, 0.0 }
 0x274   : > { %v1296_v1 = vpop.f32.mrf.mxu2  ;;  %v1398_v41 = vadd.f32 %v1397_v32, %v1396_v34 }
 0x275   : > { %v2303_v12 = vadd.f32 %v1841_v6, %v1296_v1  ;;  %v2380_v1 = vpop.permute.xlu0 %1381 }
 0x277   : > { %v1317_v42 = vmax.f32 %v2303_v12, 0.0 }
 0x279   : > { %v1387_v13 = vmul.f32 %v2318_v52, %v1317_v42 }
 0x27b   : > { %v1399_v20 = vsel %vm1180_vm1, %v1387_v13, 0.0 }
 0x27c   : > { %v1299_v3 = vpop.f32.mrf.mxu2  ;;  %v1400_v49 = vadd.f32 %v1399_v20, %v1398_v41 }
 0x27d   : > { %v2312_v47 = vadd.f32 %v1841_v6, %v1299_v3 }
 0x27f   : > { %v1318_v23 = vmax.f32 %v2312_v47, 0.0 }
 0x281   : > { %v1388_v19 = vmul.f32 %v2305_v14, %v1318_v23 }
 0x283   : > { %v1401_v43 = vsel %vm1180_vm1, %v1388_v19, 0.0 }
 0x284   : > { %v1301_v29 = vpop.f32.mrf.mxu2  ;;  %v1402_v54 = vadd.f32 %v1401_v43, %v1400_v49 }
 0x285   : > { %v2320_v18 = vadd.f32 %v1841_v6, %v1301_v29 }
 0x287   : > { %v1319_v27 = vmax.f32 %v2320_v18, 0.0 }
 0x289   : > { %v1389_v37 = vmul.f32 %v2338_v55, %v1319_v27 }
 0x28b   : > { %v1403_v51 = vsel %vm1180_vm1, %v1389_v37, 0.0 }
 0x28c   : > { %v1304_v8 = vpop.f32.mrf.mxu2  ;;  %v1404_v58 = vadd.f32 %v1403_v51, %v1402_v54 }
 0x28d   : > { %v2329_v24 = vadd.f32 %v1841_v6, %v1304_v8 }
 0x28f   : > { %v1320_v30 = vmax.f32 %v2329_v24, 0.0 }
 0x291   : > { %v1390_v46 = vmul.f32 %v2356_v22, %v1320_v30 }
 0x293   : > { %v1405_v56 = vsel %vm1180_vm1, %v1390_v46, 0.0 }
 0x294   : > { %v1306_v44 = vpop.f32.mrf.mxu2  ;;  %v1406_v62 = vadd.f32 %v1405_v56, %v1404_v58 }
 0x295   : > { %v2336_v28 = vadd.f32 %v1841_v6, %v1306_v44 }
 0x297   : > { %v1321_v38 = vmax.f32 %v2336_v28, 0.0 }
 0x299   : > { %v1391_v53 = vmul.f32 %v2363_v50, %v1321_v38 }
 0x29b   : > { %v1407_v60 = vsel %vm1180_vm1, %v1391_v53, 0.0 }
 0x29c   : > { %v1309_v35 = vpop.f32.mrf.mxu2  ;;  %v1408_v3 = vadd.f32 %v1407_v60, %v1406_v62 }
 0x29d   : > { %v2354_v39 = vadd.f32 %v1841_v6, %v1309_v35  ;;  %v1794_v35 = vld [vmem:[%s2479_s10 + $0x8] sm:$0xff] }
 0x29f   : > { %v1322_v48 = vmax.f32 %v2354_v39, 0.0 }
 0x2a1   : > { %v1392_v57 = vmul.f32 %v2369_v25, %v1322_v48 }
 0x2a3   : > { %v1409_v63 = vsel %vm1180_vm1, %v1392_v57, 0.0 }
 0x2a4   : > { %v1311_v59 = vpop.f32.mrf.mxu2  ;;  %v1410_v29 = vadd.f32 %v1409_v63, %v1408_v3 }
 0x2a5   : > { %v2376_v61 = vadd.f32 %v1841_v6, %v1311_v59 }
 0x2a7   : > { %v1323_v0 = vmax.f32 %v2376_v61, 0.0 }
 0x2a9   : > { %v1393_v4 = vmul.f32 %v2380_v1, %v1323_v0 }
 0x2ab   : > { %v1411_v8 = vsel %vm1180_vm1, %v1393_v4, 0.0 }
 0x2ac   : > { %v1412_v44 = vadd.f32 %v1411_v8, %v1410_v29 }
 0x2ae   : > { %v1413_v45 = vrot.slane %v1412_v44, 4 }
 0x2b0   : > { %v1414_v21 = vadd.f32 %v1413_v45, %v1412_v44 }
 0x2b2   : > { %v1415_v6 = vrot.slane %v1414_v21, 2 }
 0x2b4   : > { %v1416_v2 = vadd.f32 %v1415_v6, %v1414_v21 }
 0x2b6   : > { %v1417_v13 = vrot.slane %v1416_v2, 1 }
 0x2b8   : > { %v1418_v26 = vadd.f32 %v1417_v13, %v1416_v2 }
 0x2ba   : > { %v1419_v31 = vpack.c.bf16 %v1418_v26, %v1418_v26 }
 0x2bc   : > { %1764 = vmatmul.msk.bf16.vlgmr.msra.gmra.mxu3 %vm1180_vm1, %v1419_v31 }
 0x2bd   : > { %1568 = vmatpush.bf16.msra.mxu3 %v1794_v35 }
 0x2c1   : > { %1569 = vmatpush.bf16.msra.mxu3 %v1793_v36 }
 0x33f   : > { %v1448_v32 = vpop.f32.mrf.mxu3 }
 0x340   : > { %v1452_v19 = vmax.f32 %v1448_v32, 0.0 }
 0x342   : > { %v1453_v34 = vpack.c.bf16 %v1452_v19, %v1452_v19 }
 0x344   : > { %1765 = vmatmul.msk.bf16.vlgmr.msrb.gmra.mxu3 %vm1455_vm3, %v1453_v34 }
 0x347   : > { %v1450_v20 = vpop.f32.mrf.mxu3 }
 0x3c7   : > { %v1472_v37 = vpop.f32.mrf.mxu3 }
 0x3c8   : > { %v1766_v40 = vmul.f32 -1.442695, %v1472_v37 }
 0x3ca   : > { %1842 = vpow2.f32 %v1766_v40 }
 0x3cf   : > { %v1474_v41 = vpop.f32.mrf.mxu3 }
 0x3d0   : > { %v1843_v43 = vpop.eup %1842 }
 0x3d1   : > { %v1479_v46 = vadd.f32 1.0, %v1843_v43 }
 0x3d3   : > { %1844 = vrcp.f32 %v1479_v46  ;;  %v1491_v54 = vand.u32 2147483648, %v1479_v46  ;;  %v1489_v57 = vand.u32 2147483647, %v1479_v46  ;;  %vm1485_vm5 = vweird.f32 %v1479_v46 }
 0x3d5   : > { %v1492_v59 = vor.u32 1.1754944e-38, %v1491_v54  ;;  %vm1490_vm7 = vcmp.eq.f32.partialorder %v1489_v57, 8.507059e+37 }
 0x3d9   : > { %v1845_v49 = vpop.eup %1844 }
 0x3da   : > { %v1481_v51 = vmul.f32 %v1845_v49, %v1479_v46  ;;  %vm1486_vm4 = vweird.f32 %v1845_v49 }
 0x3db   : > { %vm1487_vm6 = vmor %vm1485_vm5, %vm1486_vm4 }
 0x3dc   : > { %v1482_v53 = vsub.f32 1.0, %v1481_v51 }
 0x3de   : > { %v1483_v56 = vmul.f32 %v1845_v49, %v1482_v53 }
 0x3e0   : > { %v1484_v58 = vadd.f32 %v1845_v49, %v1483_v56 }
 0x3e2   : > { %v1488_v60 = vsel %vm1487_vm6, %v1845_v49, %v1484_v58 }
 0x3e3   : > { %v1493_v62 = vsel %vm1490_vm7, %v1492_v59, %v1488_v60 }
 0x3e4   : > { %v1495_v63 = vperm.slane %v1493_v62, 0 }
 0x3e6   : > { %v1496_v3 = vmul.f32 %v1495_v63, %v1314_v16  ;;  %v1497_v4 = vmul.f32 %v1495_v63, %v1315_v15  ;;  %v1498_v29 = vmul.f32 %v1495_v63, %v1316_v17  ;;  %v1499_v8 = vmul.f32 %v1495_v63, %v1317_v42 }
 0x3e7   : > { %v1500_v21 = vmul.f32 %v1495_v63, %v1318_v23  ;;  %v1501_v10 = vmul.f32 %v1495_v63, %v1319_v27  ;;  %v1504_v18 = vmul.f32 %v1495_v63, %v1322_v48 }
 0x3e8   : > { %v1506_v44 = vmul.f32 %v1496_v3, %v2290_v5  ;;  %v1507_v45 = vmul.f32 %v1497_v4, %v2308_v33  ;;  %v1508_v6 = vmul.f32 %v1498_v29, %v2295_v7  ;;  %v1509_v9 = vmul.f32 %v1499_v8, %v2318_v52 }
 0x3e9   : > { %v1502_v5 = vmul.f32 %v1495_v63, %v1320_v30  ;;  %v1510_v33 = vmul.f32 %v1500_v21, %v2305_v14  ;;  %v1503_v7 = vmul.f32 %v1495_v63, %v1321_v38  ;;  %v1511_v47 = vmul.f32 %v1501_v10, %v2338_v55 }
 0x3ea   : > { %v1516_v11 = vsel %vm1180_vm1, %v1506_v44, 0.0  ;;  %v1517_v15 = vsel %vm1180_vm1, %v1507_v45, 0.0  ;;  %v1519_v16 = vsel %vm1180_vm1, %v1508_v6, 0.0  ;;  %v1521_v42 = vsel %vm1180_vm1, %v1509_v9, 0.0 }
 0x3eb   : > { %v1518_v12 = vadd.f32 %v1517_v15, %v1516_v11  ;;  %v1512_v23 = vmul.f32 %v1502_v5, %v2356_v22  ;;  %v1523_v24 = vsel %vm1180_vm1, %v1510_v33, 0.0  ;;  %v1505_v14 = vmul.f32 %v1495_v63, %v1323_v0 }
 0x3ec   : > { %v1513_v30 = vmul.f32 %v1503_v7, %v2363_v50  ;;  %v1525_v28 = vsel %vm1180_vm1, %v1511_v47, 0.0  ;;  %v1514_v55 = vmul.f32 %v1504_v18, %v2369_v25 }
 0x3ed   : > { %v1520_v17 = vadd.f32 %v1519_v16, %v1518_v12  ;;  %v1527_v2 = vsel %vm1180_vm1, %v1512_v23, 0.0  ;;  %v1515_v39 = vmul.f32 %v1505_v14, %v2380_v1  ;;  %v1546_v1 = vld [vmem:[%s2480_s11] sm:$0x1] }
 0x3ee   : > { %v1529_v22 = vsel %vm1180_vm1, %v1513_v30, 0.0  ;;  %v1531_v61 = vsel %vm1180_vm1, %v1514_v55, 0.0 }
 0x3ef   : > { %v1522_v52 = vadd.f32 %v1521_v42, %v1520_v17  ;;  %v1533_v50 = vsel %vm1180_vm1, %v1515_v39, 0.0 }
 0x3f1   : > { %v1524_v27 = vadd.f32 %v1523_v24, %v1522_v52 }
 0x3f3   : > { %v1526_v38 = vadd.f32 %v1525_v28, %v1524_v27 }
 0x3f5   : > { %v1528_v13 = vadd.f32 %v1527_v2, %v1526_v38 }
 0x3f7   : > { %v1530_v48 = vadd.f32 %v1529_v22, %v1528_v13 }
 0x3f9   : > { %v1532_v0 = vadd.f32 %v1531_v61, %v1530_v48 }
 0x3fb   : > { %v1534_v26 = vadd.f32 %v1533_v50, %v1532_v0 }
 0x3fd   : > { %v1535_v31 = vrot.slane %v1534_v26, 4 }
 0x3ff   : > { %v1536_v32 = vadd.f32 %v1535_v31, %v1534_v26 }
 0x401   : > { %v1537_v19 = vrot.slane %v1536_v32, 2 }
 0x403   : > { %v1538_v25 = vadd.f32 %v1537_v19, %v1536_v32 }
 0x405   : > { %v1539_v34 = vrot.slane %v1538_v25, 1 }
 0x407   : > { %v1540_v20 = vadd.f32 %v1539_v34, %v1538_v25 }
 0x409   : > { %v1541_v35 = vpack.c.bf16 %v1540_v20, %v1540_v20 }
 0x40b   : > { %1775 = vmatmul.msk.bf16.vlgmr.msra.gmra.mxu3 %vm1180_vm1, %v1541_v35 }
 0x48e   : > { %v1571_v36 = vpop.f32.mrf.mxu3 }
 0x48f   : > { %v1572_v37 = vadd.f32 %v1571_v36, %v1546_v1 }
 0x491   : > { %1575 = vst [vmem:[%s405_s18] sm:$0x1] %v1572_v37 }
 0x492   : > { %1873 = shalt.err (!%p1870_p3)
}
 0x493   : > { %1796 = dma.vmem_to_hbm [thread:$0]  (%p2014_p5), %s1588_s30, 16, %s1590_s20, %s1577_s26  }
 0x496   : > { %v1573_v40 = vpop.f32.mrf.mxu3 }
 0x497 PF: > { %p1802_p4 = scmp.ge.s32.totalorder %s1908_s24, 2  ;;  %s1601_s19 = sand.u32 1, %s1896_s21  }
 0x498   : > { %s1602_s15 = scalar_lea.sflag [#allocation3], %s1601_s19 }
 0x499   : > { %p1799_p7 = pnand %p1802_p4, %p2018_p6 }
 0x49b   : > { %p1800_p8 = pneg %p1799_p7 }
 0x49d   : > { %1891 = dma.done.wait (%p1800_p8), %s1602_s15, 16  }
 0x49e   : > { %1893 = vsyncadd (%p1800_p8), %s1602_s15, 4294967280  ;;  %s2489_s0 = sld [smem:[#allocation5_spill]]  ;;  %p22_p9 = scmp.ge.s32.totalorder %s2001_s27, 4  }
 0x49f   : > { %s2490_s21 = smov %s1900_s22  ;;  %s2491_s22 = smov %s1904_s23 }
 0x4a0   : > { %s2493_s24 = smov %s2001_s27  ;;  %24 = sbr.rel (!%p22_p9) target bundleno = 6 (0x6), region = 103 }
 0x4a4   : > { %s2492_s23 = smov %s2489_s0 }
 0x4a5   :  { %1607 = vsyncpa [#allocation3], 1 }
 0x4a6   :  { %1609 = vsyncpa [#allocation3 + $0x1], 1 }

</bundles_post_ra>
